<compile_context>
chip_gen: v7x
topology: tpu7x:2x2x1
jax: 0.10.0
libtpu: 0.0.40
codegen_flags: <defaults>
</compile_context>

<pallas_src>
import numpy as np
import jax
import jax.numpy as jnp
from jax.experimental import pallas as pl
from jax.experimental.pallas import tpu as pltpu


# --------------------------------- kernel -----------------------------------


def _lenet5_kernel(x_ref,
                   w1_ref, b1_ref, hp1_ref, p1_ref,
                   w2_ref, b2_ref, hp2_ref, p2_ref,
                   w3_ref, b3_ref,
                   w4_ref, b4_ref, w5_ref, b5_ref,
                   out_ref):
    """One batch image per grid step; every intermediate stays in vregs."""
    f32 = jnp.float32

    # conv1 (C_in -> 6, 5x5) + tanh : input (32, 32*C lanes) -> (28, 28*6 lanes)
    # 5 banded matmuls (one per kernel row), register-resident f32 accumulator.
    acc1 = jnp.zeros((28, 256), f32)
    for di in range(5):
        acc1 = acc1 + jnp.dot(x_ref[di:di + 28, :], w1_ref[di],
                              preferred_element_type=f32)
    a1 = jnp.tanh(acc1 + b1_ref[...])                      # (28, 256), 168 valid

    # avgpool1 2x2, fused as two constant matmuls (row-pair sum, col-pair *0.25)
    hs1 = jnp.dot(hp1_ref[...], a1, preferred_element_type=f32)   # (14, 256)
    p1 = jnp.dot(hs1, p1_ref[...], preferred_element_type=f32)    # (14, 128), 84 valid

    # conv2 (6 -> 16, 5x5) + tanh : (14, 14*6) -> (10, 10*16)
    acc2 = jnp.zeros((10, 256), f32)
    for di in range(5):
        acc2 = acc2 + jnp.dot(p1[di:di + 10, :], w2_ref[di],
                              preferred_element_type=f32)
    a2 = jnp.tanh(acc2 + b2_ref[...])                      # (10, 256), 160 valid

    # avgpool2 2x2
    hs2 = jnp.dot(hp2_ref[...], a2, preferred_element_type=f32)   # (5, 256)
    p2 = jnp.dot(hs2, p2_ref[...], preferred_element_type=f32)    # (5, 128), 80 valid

    # conv3 (16 -> 120, 5x5) + tanh : (5, 5*16) -> (1, 120)  (== flat features)
    acc3 = jnp.zeros((1, 128), f32)
    for di in range(5):
        acc3 = acc3 + jnp.dot(p2[di:di + 1, :], w3_ref[di],
                              preferred_element_type=f32)
    feat = jnp.tanh(acc3 + b3_ref[...])                    # (1, 128), 120 valid

    # classifier: Linear(120 -> 84) + tanh, Linear(84 -> n_classes)
    h = jnp.tanh(jnp.dot(feat, w4_ref[...], preferred_element_type=f32)
                 + b4_ref[...])
    logits = jnp.dot(h, w5_ref[...], preferred_element_type=f32) + b5_ref[...]
    out_ref[...] = jnp.broadcast_to(logits, out_ref.shape)


# --------------------------- one-off weight packing --------------------------


def _pack_toeplitz(w, out_w, k_pad, n_pad):
    """PyTorch conv weight (OC, IC, KH, KW) -> (KH, k_pad, n_pad) banded slabs.

    slab[di, (x'*IC + ci), (ox*OC + oc)] = w[oc, ci, di, x'-ox]  if 0 <= x'-ox < KW.
    """
    w = np.asarray(w, np.float32)
    oc, ic, kh, kw = w.shape
    wp = np.zeros((kh, k_pad, n_pad), np.float32)
    for di in range(kh):
        for dj in range(kw):
            blk = w[:, :, di, dj].T                        # (ic, oc)
            for ox in range(out_w):
                r = (ox + dj) * ic
                c = ox * oc
                wp[di, r:r + ic, c:c + oc] = blk
    return jnp.asarray(wp)


def _pack_wpool(in_w, ch, k_pad, n_pad):
    """Column-pair-sum * 0.25 selection matrix for the W direction of the pool."""
    p = np.zeros((k_pad, n_pad), np.float32)
    for px in range(in_w // 2):
        for e in (0, 1):
            src = (2 * px + e) * ch
            dst = px * ch
            for c in range(ch):
                p[src + c, dst + c] = 0.25
    return jnp.asarray(p)


def _pack_hpool(out_h):
    """Row-pair-sum matrix for the H direction of the pool: (out_h, 2*out_h)."""
    hp = np.zeros((out_h, 2 * out_h), np.float32)
    idx = np.arange(out_h)
    hp[idx, 2 * idx] = 1.0
    hp[idx, 2 * idx + 1] = 1.0
    return jnp.asarray(hp)


def _pack_bias(b, reps, n_pad):
    b = np.asarray(b, np.float32)
    v = np.zeros((1, n_pad), np.float32)
    t = np.tile(b, reps)
    v[0, :t.size] = t
    return jnp.asarray(v)


def _pack_fc(w, k_pad=128, n_pad=128):
    w = np.asarray(w, np.float32)                          # (out, in)
    m = np.zeros((k_pad, n_pad), np.float32)
    m[:w.shape[1], :w.shape[0]] = w.T
    return jnp.asarray(m)


def pack_lenet5_params(params):
    """Hoisted out of the per-call path: run ONCE, pass the result to forward."""
    ic = params["w1"].shape[1]
    assert 32 * ic <= 128, "Toeplitz-in-lanes packing needs W*Cin <= 128"
    return {
        "w1": _pack_toeplitz(params["w1"], out_w=28, k_pad=128, n_pad=256),
        "b1": _pack_bias(params["b1"], reps=28, n_pad=256),
        "hp1": _pack_hpool(14),
        "p1": _pack_wpool(in_w=28, ch=6, k_pad=256, n_pad=128),
        "w2": _pack_toeplitz(params["w2"], out_w=10, k_pad=128, n_pad=256),
        "b2": _pack_bias(params["b2"], reps=10, n_pad=256),
        "hp2": _pack_hpool(5),
        "p2": _pack_wpool(in_w=10, ch=16, k_pad=256, n_pad=128),
        "w3": _pack_toeplitz(params["w3"], out_w=1, k_pad=128, n_pad=128),
        "b3": _pack_bias(params["b3"], reps=1, n_pad=128),
        "w4": _pack_fc(params["w4"]),
        "b4": _pack_bias(params["b4"], reps=1, n_pad=128),
        "w5": _pack_fc(params["w5"]),
        "b5": _pack_bias(params["b5"], reps=1, n_pad=128),
    }


# ------------------------------ forward wrapper ------------------------------


def lenet5_forward(packed, x, n_classes):
    B, C, H, W = x.shape
    assert H == 32 and W == 32, "LeNet-5 geometry requires 32x32 spatial input"
    assert W * C <= 128 and n_classes <= 128

    # Per-call input plumbing only: NCHW -> per-row lane-packed (B, 32, W*C),
    # zero-padded to 128 lanes.
    xin = jnp.transpose(x, (0, 2, 3, 1)).astype(jnp.float32).reshape(B, H, W * C)
    xp = jnp.zeros((B, 32, 128), jnp.float32).at[:, :, :W * C].set(xin)

    weights = (
        packed["w1"], packed["b1"], packed["hp1"], packed["p1"],
        packed["w2"], packed["b2"], packed["hp2"], packed["p2"],
        packed["w3"], packed["b3"],
        packed["w4"], packed["b4"], packed["w5"], packed["b5"],
    )

    def _full_spec(a):
        nd = a.ndim
        return pl.BlockSpec(a.shape, lambda b, _nd=nd: (0,) * _nd)

    out = pl.pallas_call(
        _lenet5_kernel,
        out_shape=jax.ShapeDtypeStruct((B, 8, 128), jnp.float32),
        grid=(B,),
        in_specs=[pl.BlockSpec((None, 32, 128), lambda b: (b, 0, 0))]
                 + [_full_spec(a) for a in weights],
        out_specs=pl.BlockSpec((None, 8, 128), lambda b: (b, 0, 0)),
        compiler_params=pltpu.CompilerParams(
            dimension_semantics=("parallel",),
            vmem_limit_bytes=16 * 1024 * 1024),
    )(xp, *weights)

    return out[:, 0, :n_classes]


# ------------------------------ params / reference ---------------------------


def init_lenet5_params(key, n_classes, input_channel=3):
    """Deterministic PyTorch-style uniform(-1/sqrt(fan_in), 1/sqrt(fan_in)) init."""
    def uni(k, shape, fan_in):
        bound = 1.0 / float(fan_in) ** 0.5
        return jax.random.uniform(k, shape, jnp.float32, -bound, bound)

    ks = jax.random.split(key, 10)
    return {
        "w1": uni(ks[0], (6, input_channel, 5, 5), input_channel * 25),
        "b1": uni(ks[1], (6,), input_channel * 25),
        "w2": uni(ks[2], (16, 6, 5, 5), 6 * 25),
        "b2": uni(ks[3], (16,), 6 * 25),
        "w3": uni(ks[4], (120, 16, 5, 5), 16 * 25),
        "b3": uni(ks[5], (120,), 16 * 25),
        "w4": uni(ks[6], (84, 120), 120),
        "b4": uni(ks[7], (84,), 120),
        "w5": uni(ks[8], (n_classes, 84), 84),
        "b5": uni(ks[9], (n_classes,), 84),
    }


def reference_forward(params, x):
    """Pure-JAX reference (correctness check only)."""
    hi = jax.lax.Precision.HIGHEST

    def conv(x, w, b):
        y = jax.lax.conv_general_dilated(
            x, w, (1, 1), "VALID",
            dimension_numbers=("NCHW", "OIHW", "NCHW"), precision=hi)
        return jnp.tanh(y + b.reshape(1, -1, 1, 1))

    def pool(x):
        B, C, H, W = x.shape
        return x.reshape(B, C, H // 2, 2, W // 2, 2).mean(axis=(3, 5))

    x = pool(conv(x, params["w1"], params["b1"]))
    x = pool(conv(x, params["w2"], params["b2"]))
    x = conv(x, params["w3"], params["b3"])
    x = x.reshape(x.shape[0], -1)
    x = jnp.tanh(jnp.dot(x, params["w4"].T, precision=hi) + params["b4"])
    return jnp.dot(x, params["w5"].T, precision=hi) + params["b5"]


if __name__ == "__main__":
    key = jax.random.PRNGKey(0)
    pkey, xkey = jax.random.split(key)

    n_classes = 10
    params = init_lenet5_params(pkey, n_classes=n_classes, input_channel=3)
    # LeNet-5 geometry requires 32x32 spatial input (conv3 yields 1x1 -> 120 feats).
    x = jax.random.normal(xkey, (2, 3, 32, 32), dtype=jnp.float32)

    packed = pack_lenet5_params(params)          # one-off, hoisted out of forward
    fwd = jax.jit(lenet5_forward, static_argnums=(2,))
    logits = fwd(packed, x, n_classes)
    jax.block_until_ready(logits)

    ref = reference_forward(params, x)
    assert logits.shape == (2, n_classes)
    assert bool(jnp.allclose(logits, ref, rtol=2e-3, atol=2e-3)), "mismatch vs reference"

    print("KERNEL_OK")
</pallas_src>

<mosaic_0001>
module attributes {stable_mosaic.version = 11 : i64} {
  func.func @_lenet5_kernel(%arg0: i32, %arg1: memref<1x32x128xf32, #tpu.memory_space<vmem>>, %arg2: memref<5x128x256xf32, #tpu.memory_space<vmem>>, %arg3: memref<1x256xf32, #tpu.memory_space<vmem>>, %arg4: memref<14x28xf32, #tpu.memory_space<vmem>>, %arg5: memref<256x128xf32, #tpu.memory_space<vmem>>, %arg6: memref<5x128x256xf32, #tpu.memory_space<vmem>>, %arg7: memref<1x256xf32, #tpu.memory_space<vmem>>, %arg8: memref<5x10xf32, #tpu.memory_space<vmem>>, %arg9: memref<256x128xf32, #tpu.memory_space<vmem>>, %arg10: memref<5x128x128xf32, #tpu.memory_space<vmem>>, %arg11: memref<1x128xf32, #tpu.memory_space<vmem>>, %arg12: memref<128x128xf32, #tpu.memory_space<vmem>>, %arg13: memref<1x128xf32, #tpu.memory_space<vmem>>, %arg14: memref<128x128xf32, #tpu.memory_space<vmem>>, %arg15: memref<1x128xf32, #tpu.memory_space<vmem>>, %arg16: memref<1x8x128xf32, #tpu.memory_space<vmem>>) attributes {dimension_semantics = [#tpu.dimension_semantics<parallel>], iteration_bounds = array<i64: 2>, scalar_prefetch = 0 : i64, scratch_operands = 0 : i64, tpu.core_type = #tpu.core_type<tc>, window_params = [{transform_indices = @transform_0, window_bounds = array<i64: 1, 32, 128>}, {pipeline_mode = #tpu.pipeline_mode<synchronous>, transform_indices = @transform_1, window_bounds = array<i64: 5, 128, 256>}, {pipeline_mode = #tpu.pipeline_mode<synchronous>, transform_indices = @transform_2, window_bounds = array<i64: 1, 256>}, {pipeline_mode = #tpu.pipeline_mode<synchronous>, transform_indices = @transform_3, window_bounds = array<i64: 14, 28>}, {pipeline_mode = #tpu.pipeline_mode<synchronous>, transform_indices = @transform_4, window_bounds = array<i64: 256, 128>}, {pipeline_mode = #tpu.pipeline_mode<synchronous>, transform_indices = @transform_5, window_bounds = array<i64: 5, 128, 256>}, {pipeline_mode = #tpu.pipeline_mode<synchronous>, transform_indices = @transform_6, window_bounds = array<i64: 1, 256>}, {pipeline_mode = #tpu.pipeline_mode<synchronous>, transform_indices = @transform_7, window_bounds = array<i64: 5, 10>}, {pipeline_mode = #tpu.pipeline_mode<synchronous>, transform_indices = @transform_8, window_bounds = array<i64: 256, 128>}, {pipeline_mode = #tpu.pipeline_mode<synchronous>, transform_indices = @transform_9, window_bounds = array<i64: 5, 128, 128>}, {pipeline_mode = #tpu.pipeline_mode<synchronous>, transform_indices = @transform_10, window_bounds = array<i64: 1, 128>}, {pipeline_mode = #tpu.pipeline_mode<synchronous>, transform_indices = @transform_11, window_bounds = array<i64: 128, 128>}, {pipeline_mode = #tpu.pipeline_mode<synchronous>, transform_indices = @transform_12, window_bounds = array<i64: 1, 128>}, {pipeline_mode = #tpu.pipeline_mode<synchronous>, transform_indices = @transform_13, window_bounds = array<i64: 128, 128>}, {pipeline_mode = #tpu.pipeline_mode<synchronous>, transform_indices = @transform_14, window_bounds = array<i64: 1, 128>}, {transform_indices = @transform_15, window_bounds = array<i64: 1, 8, 128>}]} {
    %cst = arith.constant 0.000000e+00 : f32
    %0 = vector.broadcast %cst : f32 to vector<28x256xf32>
    %c0 = arith.constant 0 : index
    %c0_0 = arith.constant 0 : index
    %c0_1 = arith.constant 0 : index
    %1 = vector.load %arg1[%c0, %c0_0, %c0_1] : memref<1x32x128xf32, #tpu.memory_space<vmem>>, vector<1x28x128xf32>
    %2 = vector.shape_cast %1 : vector<1x28x128xf32> to vector<28x128xf32>
    %c0_2 = arith.constant 0 : index
    %c0_3 = arith.constant 0 : index
    %c0_4 = arith.constant 0 : index
    %3 = vector.load %arg2[%c0_2, %c0_3, %c0_4] : memref<5x128x256xf32, #tpu.memory_space<vmem>>, vector<1x128x256xf32>
    %4 = vector.shape_cast %3 : vector<1x128x256xf32> to vector<128x256xf32>
    %cst_5 = arith.constant dense<0.000000e+00> : vector<28x256xf32>
    %5 = tpu.matmul %2, %4, %cst_5 {dimension_numbers = #tpu.dot_dimension_numbers<[1], [0], [0], [1], [0, 0, 1, 1], [], []>} : vector<28x128xf32>, vector<128x256xf32>, vector<28x256xf32> -> vector<28x256xf32>
    %6 = arith.addf %0, %5 : vector<28x256xf32>
    %c0_6 = arith.constant 0 : index
    %c1 = arith.constant 1 : index
    %c0_7 = arith.constant 0 : index
    %7 = vector.load %arg1[%c0_6, %c1, %c0_7] : memref<1x32x128xf32, #tpu.memory_space<vmem>>, vector<1x28x128xf32>
    %8 = vector.shape_cast %7 : vector<1x28x128xf32> to vector<28x128xf32>
    %c1_8 = arith.constant 1 : index
    %c0_9 = arith.constant 0 : index
    %c0_10 = arith.constant 0 : index
    %9 = vector.load %arg2[%c1_8, %c0_9, %c0_10] : memref<5x128x256xf32, #tpu.memory_space<vmem>>, vector<1x128x256xf32>
    %10 = vector.shape_cast %9 : vector<1x128x256xf32> to vector<128x256xf32>
    %cst_11 = arith.constant dense<0.000000e+00> : vector<28x256xf32>
    %11 = tpu.matmul %8, %10, %cst_11 {dimension_numbers = #tpu.dot_dimension_numbers<[1], [0], [0], [1], [0, 0, 1, 1], [], []>} : vector<28x128xf32>, vector<128x256xf32>, vector<28x256xf32> -> vector<28x256xf32>
    %12 = arith.addf %6, %11 : vector<28x256xf32>
    %c0_12 = arith.constant 0 : index
    %c2 = arith.constant 2 : index
    %c0_13 = arith.constant 0 : index
    %13 = vector.load %arg1[%c0_12, %c2, %c0_13] : memref<1x32x128xf32, #tpu.memory_space<vmem>>, vector<1x28x128xf32>
    %14 = vector.shape_cast %13 : vector<1x28x128xf32> to vector<28x128xf32>
    %c2_14 = arith.constant 2 : index
    %c0_15 = arith.constant 0 : index
    %c0_16 = arith.constant 0 : index
    %15 = vector.load %arg2[%c2_14, %c0_15, %c0_16] : memref<5x128x256xf32, #tpu.memory_space<vmem>>, vector<1x128x256xf32>
    %16 = vector.shape_cast %15 : vector<1x128x256xf32> to vector<128x256xf32>
    %cst_17 = arith.constant dense<0.000000e+00> : vector<28x256xf32>
    %17 = tpu.matmul %14, %16, %cst_17 {dimension_numbers = #tpu.dot_dimension_numbers<[1], [0], [0], [1], [0, 0, 1, 1], [], []>} : vector<28x128xf32>, vector<128x256xf32>, vector<28x256xf32> -> vector<28x256xf32>
    %18 = arith.addf %12, %17 : vector<28x256xf32>
    %c0_18 = arith.constant 0 : index
    %c3 = arith.constant 3 : index
    %c0_19 = arith.constant 0 : index
    %19 = vector.load %arg1[%c0_18, %c3, %c0_19] : memref<1x32x128xf32, #tpu.memory_space<vmem>>, vector<1x28x128xf32>
    %20 = vector.shape_cast %19 : vector<1x28x128xf32> to vector<28x128xf32>
    %c3_20 = arith.constant 3 : index
    %c0_21 = arith.constant 0 : index
    %c0_22 = arith.constant 0 : index
    %21 = vector.load %arg2[%c3_20, %c0_21, %c0_22] : memref<5x128x256xf32, #tpu.memory_space<vmem>>, vector<1x128x256xf32>
    %22 = vector.shape_cast %21 : vector<1x128x256xf32> to vector<128x256xf32>
    %cst_23 = arith.constant dense<0.000000e+00> : vector<28x256xf32>
    %23 = tpu.matmul %20, %22, %cst_23 {dimension_numbers = #tpu.dot_dimension_numbers<[1], [0], [0], [1], [0, 0, 1, 1], [], []>} : vector<28x128xf32>, vector<128x256xf32>, vector<28x256xf32> -> vector<28x256xf32>
    %24 = arith.addf %18, %23 : vector<28x256xf32>
    %c0_24 = arith.constant 0 : index
    %c4 = arith.constant 4 : index
    %c0_25 = arith.constant 0 : index
    %25 = vector.load %arg1[%c0_24, %c4, %c0_25] : memref<1x32x128xf32, #tpu.memory_space<vmem>>, vector<1x28x128xf32>
    %26 = vector.shape_cast %25 : vector<1x28x128xf32> to vector<28x128xf32>
    %c4_26 = arith.constant 4 : index
    %c0_27 = arith.constant 0 : index
    %c0_28 = arith.constant 0 : index
    %27 = vector.load %arg2[%c4_26, %c0_27, %c0_28] : memref<5x128x256xf32, #tpu.memory_space<vmem>>, vector<1x128x256xf32>
    %28 = vector.shape_cast %27 : vector<1x128x256xf32> to vector<128x256xf32>
    %cst_29 = arith.constant dense<0.000000e+00> : vector<28x256xf32>
    %29 = tpu.matmul %26, %28, %cst_29 {dimension_numbers = #tpu.dot_dimension_numbers<[1], [0], [0], [1], [0, 0, 1, 1], [], []>} : vector<28x128xf32>, vector<128x256xf32>, vector<28x256xf32> -> vector<28x256xf32>
    %30 = arith.addf %24, %29 : vector<28x256xf32>
    %c0_30 = arith.constant 0 : index
    %c0_31 = arith.constant 0 : index
    %31 = vector.load %arg3[%c0_30, %c0_31] : memref<1x256xf32, #tpu.memory_space<vmem>>, vector<1x256xf32>
    %32 = vector.broadcast %31 : vector<1x256xf32> to vector<28x256xf32>
    %33 = arith.addf %30, %32 : vector<28x256xf32>
    %34 = math.tanh %33 : vector<28x256xf32>
    %c0_32 = arith.constant 0 : index
    %c0_33 = arith.constant 0 : index
    %35 = vector.load %arg4[%c0_32, %c0_33] : memref<14x28xf32, #tpu.memory_space<vmem>>, vector<14x28xf32>
    %cst_34 = arith.constant dense<0.000000e+00> : vector<14x256xf32>
    %36 = tpu.matmul %35, %34, %cst_34 {dimension_numbers = #tpu.dot_dimension_numbers<[1], [0], [0], [1], [0, 0, 1, 1], [], []>} : vector<14x28xf32>, vector<28x256xf32>, vector<14x256xf32> -> vector<14x256xf32>
    %c0_35 = arith.constant 0 : index
    %c0_36 = arith.constant 0 : index
    %37 = vector.load %arg5[%c0_35, %c0_36] : memref<256x128xf32, #tpu.memory_space<vmem>>, vector<256x128xf32>
    %cst_37 = arith.constant dense<0.000000e+00> : vector<14x128xf32>
    %38 = tpu.matmul %36, %37, %cst_37 {dimension_numbers = #tpu.dot_dimension_numbers<[1], [0], [0], [1], [0, 0, 1, 1], [], []>} : vector<14x256xf32>, vector<256x128xf32>, vector<14x128xf32> -> vector<14x128xf32>
    %cst_38 = arith.constant 0.000000e+00 : f32
    %39 = vector.broadcast %cst_38 : f32 to vector<10x256xf32>
    %40 = vector.extract_strided_slice %38 {offsets = [0, 0], sizes = [10, 128], strides = [1, 1]} : vector<14x128xf32> to vector<10x128xf32>
    %c0_39 = arith.constant 0 : index
    %c0_40 = arith.constant 0 : index
    %c0_41 = arith.constant 0 : index
    %41 = vector.load %arg6[%c0_39, %c0_40, %c0_41] : memref<5x128x256xf32, #tpu.memory_space<vmem>>, vector<1x128x256xf32>
    %42 = vector.shape_cast %41 : vector<1x128x256xf32> to vector<128x256xf32>
    %cst_42 = arith.constant dense<0.000000e+00> : vector<10x256xf32>
    %43 = tpu.matmul %40, %42, %cst_42 {dimension_numbers = #tpu.dot_dimension_numbers<[1], [0], [0], [1], [0, 0, 1, 1], [], []>} : vector<10x128xf32>, vector<128x256xf32>, vector<10x256xf32> -> vector<10x256xf32>
    %44 = arith.addf %39, %43 : vector<10x256xf32>
    %45 = vector.extract_strided_slice %38 {offsets = [1, 0], sizes = [10, 128], strides = [1, 1]} : vector<14x128xf32> to vector<10x128xf32>
    %c1_43 = arith.constant 1 : index
    %c0_44 = arith.constant 0 : index
    %c0_45 = arith.constant 0 : index
    %46 = vector.load %arg6[%c1_43, %c0_44, %c0_45] : memref<5x128x256xf32, #tpu.memory_space<vmem>>, vector<1x128x256xf32>
    %47 = vector.shape_cast %46 : vector<1x128x256xf32> to vector<128x256xf32>
    %cst_46 = arith.constant dense<0.000000e+00> : vector<10x256xf32>
    %48 = tpu.matmul %45, %47, %cst_46 {dimension_numbers = #tpu.dot_dimension_numbers<[1], [0], [0], [1], [0, 0, 1, 1], [], []>} : vector<10x128xf32>, vector<128x256xf32>, vector<10x256xf32> -> vector<10x256xf32>
    %49 = arith.addf %44, %48 : vector<10x256xf32>
    %50 = vector.extract_strided_slice %38 {offsets = [2, 0], sizes = [10, 128], strides = [1, 1]} : vector<14x128xf32> to vector<10x128xf32>
    %c2_47 = arith.constant 2 : index
    %c0_48 = arith.constant 0 : index
    %c0_49 = arith.constant 0 : index
    %51 = vector.load %arg6[%c2_47, %c0_48, %c0_49] : memref<5x128x256xf32, #tpu.memory_space<vmem>>, vector<1x128x256xf32>
    %52 = vector.shape_cast %51 : vector<1x128x256xf32> to vector<128x256xf32>
    %cst_50 = arith.constant dense<0.000000e+00> : vector<10x256xf32>
    %53 = tpu.matmul %50, %52, %cst_50 {dimension_numbers = #tpu.dot_dimension_numbers<[1], [0], [0], [1], [0, 0, 1, 1], [], []>} : vector<10x128xf32>, vector<128x256xf32>, vector<10x256xf32> -> vector<10x256xf32>
    %54 = arith.addf %49, %53 : vector<10x256xf32>
    %55 = vector.extract_strided_slice %38 {offsets = [3, 0], sizes = [10, 128], strides = [1, 1]} : vector<14x128xf32> to vector<10x128xf32>
    %c3_51 = arith.constant 3 : index
    %c0_52 = arith.constant 0 : index
    %c0_53 = arith.constant 0 : index
    %56 = vector.load %arg6[%c3_51, %c0_52, %c0_53] : memref<5x128x256xf32, #tpu.memory_space<vmem>>, vector<1x128x256xf32>
    %57 = vector.shape_cast %56 : vector<1x128x256xf32> to vector<128x256xf32>
    %cst_54 = arith.constant dense<0.000000e+00> : vector<10x256xf32>
    %58 = tpu.matmul %55, %57, %cst_54 {dimension_numbers = #tpu.dot_dimension_numbers<[1], [0], [0], [1], [0, 0, 1, 1], [], []>} : vector<10x128xf32>, vector<128x256xf32>, vector<10x256xf32> -> vector<10x256xf32>
    %59 = arith.addf %54, %58 : vector<10x256xf32>
    %60 = vector.extract_strided_slice %38 {offsets = [4, 0], sizes = [10, 128], strides = [1, 1]} : vector<14x128xf32> to vector<10x128xf32>
    %c4_55 = arith.constant 4 : index
    %c0_56 = arith.constant 0 : index
    %c0_57 = arith.constant 0 : index
    %61 = vector.load %arg6[%c4_55, %c0_56, %c0_57] : memref<5x128x256xf32, #tpu.memory_space<vmem>>, vector<1x128x256xf32>
    %62 = vector.shape_cast %61 : vector<1x128x256xf32> to vector<128x256xf32>
    %cst_58 = arith.constant dense<0.000000e+00> : vector<10x256xf32>
    %63 = tpu.matmul %60, %62, %cst_58 {dimension_numbers = #tpu.dot_dimension_numbers<[1], [0], [0], [1], [0, 0, 1, 1], [], []>} : vector<10x128xf32>, vector<128x256xf32>, vector<10x256xf32> -> vector<10x256xf32>
    %64 = arith.addf %59, %63 : vector<10x256xf32>
    %c0_59 = arith.constant 0 : index
    %c0_60 = arith.constant 0 : index
    %65 = vector.load %arg7[%c0_59, %c0_60] : memref<1x256xf32, #tpu.memory_space<vmem>>, vector<1x256xf32>
    %66 = vector.broadcast %65 : vector<1x256xf32> to vector<10x256xf32>
    %67 = arith.addf %64, %66 : vector<10x256xf32>
    %68 = math.tanh %67 : vector<10x256xf32>
    %c0_61 = arith.constant 0 : index
    %c0_62 = arith.constant 0 : index
    %69 = vector.load %arg8[%c0_61, %c0_62] : memref<5x10xf32, #tpu.memory_space<vmem>>, vector<5x10xf32>
    %cst_63 = arith.constant dense<0.000000e+00> : vector<5x256xf32>
    %70 = tpu.matmul %69, %68, %cst_63 {dimension_numbers = #tpu.dot_dimension_numbers<[1], [0], [0], [1], [0, 0, 1, 1], [], []>} : vector<5x10xf32>, vector<10x256xf32>, vector<5x256xf32> -> vector<5x256xf32>
    %c0_64 = arith.constant 0 : index
    %c0_65 = arith.constant 0 : index
    %71 = vector.load %arg9[%c0_64, %c0_65] : memref<256x128xf32, #tpu.memory_space<vmem>>, vector<256x128xf32>
    %cst_66 = arith.constant dense<0.000000e+00> : vector<5x128xf32>
    %72 = tpu.matmul %70, %71, %cst_66 {dimension_numbers = #tpu.dot_dimension_numbers<[1], [0], [0], [1], [0, 0, 1, 1], [], []>} : vector<5x256xf32>, vector<256x128xf32>, vector<5x128xf32> -> vector<5x128xf32>
    %cst_67 = arith.constant 0.000000e+00 : f32
    %73 = vector.broadcast %cst_67 : f32 to vector<1x128xf32>
    %74 = vector.extract_strided_slice %72 {offsets = [0, 0], sizes = [1, 128], strides = [1, 1]} : vector<5x128xf32> to vector<1x128xf32>
    %c0_68 = arith.constant 0 : index
    %c0_69 = arith.constant 0 : index
    %c0_70 = arith.constant 0 : index
    %75 = vector.load %arg10[%c0_68, %c0_69, %c0_70] : memref<5x128x128xf32, #tpu.memory_space<vmem>>, vector<1x128x128xf32>
    %76 = vector.shape_cast %75 : vector<1x128x128xf32> to vector<128x128xf32>
    %cst_71 = arith.constant dense<0.000000e+00> : vector<1x128xf32>
    %77 = tpu.matmul %74, %76, %cst_71 {dimension_numbers = #tpu.dot_dimension_numbers<[1], [0], [0], [1], [0, 0, 1, 1], [], []>} : vector<1x128xf32>, vector<128x128xf32>, vector<1x128xf32> -> vector<1x128xf32>
    %78 = arith.addf %73, %77 : vector<1x128xf32>
    %79 = vector.extract_strided_slice %72 {offsets = [1, 0], sizes = [1, 128], strides = [1, 1]} : vector<5x128xf32> to vector<1x128xf32>
    %c1_72 = arith.constant 1 : index
    %c0_73 = arith.constant 0 : index
    %c0_74 = arith.constant 0 : index
    %80 = vector.load %arg10[%c1_72, %c0_73, %c0_74] : memref<5x128x128xf32, #tpu.memory_space<vmem>>, vector<1x128x128xf32>
    %81 = vector.shape_cast %80 : vector<1x128x128xf32> to vector<128x128xf32>
    %cst_75 = arith.constant dense<0.000000e+00> : vector<1x128xf32>
    %82 = tpu.matmul %79, %81, %cst_75 {dimension_numbers = #tpu.dot_dimension_numbers<[1], [0], [0], [1], [0, 0, 1, 1], [], []>} : vector<1x128xf32>, vector<128x128xf32>, vector<1x128xf32> -> vector<1x128xf32>
    %83 = arith.addf %78, %82 : vector<1x128xf32>
    %84 = vector.extract_strided_slice %72 {offsets = [2, 0], sizes = [1, 128], strides = [1, 1]} : vector<5x128xf32> to vector<1x128xf32>
    %c2_76 = arith.constant 2 : index
    %c0_77 = arith.constant 0 : index
    %c0_78 = arith.constant 0 : index
    %85 = vector.load %arg10[%c2_76, %c0_77, %c0_78] : memref<5x128x128xf32, #tpu.memory_space<vmem>>, vector<1x128x128xf32>
    %86 = vector.shape_cast %85 : vector<1x128x128xf32> to vector<128x128xf32>
    %cst_79 = arith.constant dense<0.000000e+00> : vector<1x128xf32>
    %87 = tpu.matmul %84, %86, %cst_79 {dimension_numbers = #tpu.dot_dimension_numbers<[1], [0], [0], [1], [0, 0, 1, 1], [], []>} : vector<1x128xf32>, vector<128x128xf32>, vector<1x128xf32> -> vector<1x128xf32>
    %88 = arith.addf %83, %87 : vector<1x128xf32>
    %89 = vector.extract_strided_slice %72 {offsets = [3, 0], sizes = [1, 128], strides = [1, 1]} : vector<5x128xf32> to vector<1x128xf32>
    %c3_80 = arith.constant 3 : index
    %c0_81 = arith.constant 0 : index
    %c0_82 = arith.constant 0 : index
    %90 = vector.load %arg10[%c3_80, %c0_81, %c0_82] : memref<5x128x128xf32, #tpu.memory_space<vmem>>, vector<1x128x128xf32>
    %91 = vector.shape_cast %90 : vector<1x128x128xf32> to vector<128x128xf32>
    %cst_83 = arith.constant dense<0.000000e+00> : vector<1x128xf32>
    %92 = tpu.matmul %89, %91, %cst_83 {dimension_numbers = #tpu.dot_dimension_numbers<[1], [0], [0], [1], [0, 0, 1, 1], [], []>} : vector<1x128xf32>, vector<128x128xf32>, vector<1x128xf32> -> vector<1x128xf32>
    %93 = arith.addf %88, %92 : vector<1x128xf32>
    %94 = vector.extract_strided_slice %72 {offsets = [4, 0], sizes = [1, 128], strides = [1, 1]} : vector<5x128xf32> to vector<1x128xf32>
    %c4_84 = arith.constant 4 : index
    %c0_85 = arith.constant 0 : index
    %c0_86 = arith.constant 0 : index
    %95 = vector.load %arg10[%c4_84, %c0_85, %c0_86] : memref<5x128x128xf32, #tpu.memory_space<vmem>>, vector<1x128x128xf32>
    %96 = vector.shape_cast %95 : vector<1x128x128xf32> to vector<128x128xf32>
    %cst_87 = arith.constant dense<0.000000e+00> : vector<1x128xf32>
    %97 = tpu.matmul %94, %96, %cst_87 {dimension_numbers = #tpu.dot_dimension_numbers<[1], [0], [0], [1], [0, 0, 1, 1], [], []>} : vector<1x128xf32>, vector<128x128xf32>, vector<1x128xf32> -> vector<1x128xf32>
    %98 = arith.addf %93, %97 : vector<1x128xf32>
    %c0_88 = arith.constant 0 : index
    %c0_89 = arith.constant 0 : index
    %99 = vector.load %arg11[%c0_88, %c0_89] : memref<1x128xf32, #tpu.memory_space<vmem>>, vector<1x128xf32>
    %100 = arith.addf %98, %99 : vector<1x128xf32>
    %101 = math.tanh %100 : vector<1x128xf32>
    %c0_90 = arith.constant 0 : index
    %c0_91 = arith.constant 0 : index
    %102 = vector.load %arg12[%c0_90, %c0_91] : memref<128x128xf32, #tpu.memory_space<vmem>>, vector<128x128xf32>
    %cst_92 = arith.constant dense<0.000000e+00> : vector<1x128xf32>
    %103 = tpu.matmul %101, %102, %cst_92 {dimension_numbers = #tpu.dot_dimension_numbers<[1], [0], [0], [1], [0, 0, 1, 1], [], []>} : vector<1x128xf32>, vector<128x128xf32>, vector<1x128xf32> -> vector<1x128xf32>
    %c0_93 = arith.constant 0 : index
    %c0_94 = arith.constant 0 : index
    %104 = vector.load %arg13[%c0_93, %c0_94] : memref<1x128xf32, #tpu.memory_space<vmem>>, vector<1x128xf32>
    %105 = arith.addf %103, %104 : vector<1x128xf32>
    %106 = math.tanh %105 : vector<1x128xf32>
    %c0_95 = arith.constant 0 : index
    %c0_96 = arith.constant 0 : index
    %107 = vector.load %arg14[%c0_95, %c0_96] : memref<128x128xf32, #tpu.memory_space<vmem>>, vector<128x128xf32>
    %cst_97 = arith.constant dense<0.000000e+00> : vector<1x128xf32>
    %108 = tpu.matmul %106, %107, %cst_97 {dimension_numbers = #tpu.dot_dimension_numbers<[1], [0], [0], [1], [0, 0, 1, 1], [], []>} : vector<1x128xf32>, vector<128x128xf32>, vector<1x128xf32> -> vector<1x128xf32>
    %c0_98 = arith.constant 0 : index
    %c0_99 = arith.constant 0 : index
    %109 = vector.load %arg15[%c0_98, %c0_99] : memref<1x128xf32, #tpu.memory_space<vmem>>, vector<1x128xf32>
    %110 = arith.addf %108, %109 : vector<1x128xf32>
    %111 = vector.shape_cast %110 : vector<1x128xf32> to vector<1x128xf32>
    %112 = vector.broadcast %111 : vector<1x128xf32> to vector<8x128xf32>
    %c0_100 = arith.constant 0 : index
    %c0_101 = arith.constant 0 : index
    %c0_102 = arith.constant 0 : index
    %113 = vector.load %arg16[%c0_100, %c0_101, %c0_102] : memref<1x8x128xf32, #tpu.memory_space<vmem>>, vector<1x8x128xf32>
    %114 = vector.shape_cast %113 : vector<1x8x128xf32> to vector<8x128xf32>
    %115 = vector.shape_cast %112 : vector<8x128xf32> to vector<1x8x128xf32>
    tpu.vector_store %arg16[%c0_100, %c0_101, %c0_102], %115 {strides = array<i32>} : memref<1x8x128xf32, #tpu.memory_space<vmem>>, vector<1x8x128xf32>,
    return
  }
  func.func @transform_0(%arg0: i32) -> (i32, i32, i32) {
    %c0_i32 = arith.constant 0 : i32
    %c0_i32_0 = arith.constant 0 : i32
    %c0_i32_1 = arith.constant 0 : i32
    return %arg0, %c0_i32, %c0_i32_0 : i32, i32, i32
  }
  func.func @transform_1(%arg0: i32) -> (i32, i32, i32) {
    %c0_i32 = arith.constant 0 : i32
    %c0_i32_0 = arith.constant 0 : i32
    %c0_i32_1 = arith.constant 0 : i32
    %c0_i32_2 = arith.constant 0 : i32
    return %c0_i32, %c0_i32_0, %c0_i32_1 : i32, i32, i32
  }
  func.func @transform_2(%arg0: i32) -> (i32, i32) {
    %c0_i32 = arith.constant 0 : i32
    %c0_i32_0 = arith.constant 0 : i32
    %c0_i32_1 = arith.constant 0 : i32
    return %c0_i32, %c0_i32_0 : i32, i32
  }
  func.func @transform_3(%arg0: i32) -> (i32, i32) {
    %c0_i32 = arith.constant 0 : i32
    %c0_i32_0 = arith.constant 0 : i32
    %c0_i32_1 = arith.constant 0 : i32
    return %c0_i32, %c0_i32_0 : i32, i32
  }
  func.func @transform_4(%arg0: i32) -> (i32, i32) {
    %c0_i32 = arith.constant 0 : i32
    %c0_i32_0 = arith.constant 0 : i32
    %c0_i32_1 = arith.constant 0 : i32
    return %c0_i32, %c0_i32_0 : i32, i32
  }
  func.func @transform_5(%arg0: i32) -> (i32, i32, i32) {
    %c0_i32 = arith.constant 0 : i32
    %c0_i32_0 = arith.constant 0 : i32
    %c0_i32_1 = arith.constant 0 : i32
    %c0_i32_2 = arith.constant 0 : i32
    return %c0_i32, %c0_i32_0, %c0_i32_1 : i32, i32, i32
  }
  func.func @transform_6(%arg0: i32) -> (i32, i32) {
    %c0_i32 = arith.constant 0 : i32
    %c0_i32_0 = arith.constant 0 : i32
    %c0_i32_1 = arith.constant 0 : i32
    return %c0_i32, %c0_i32_0 : i32, i32
  }
  func.func @transform_7(%arg0: i32) -> (i32, i32) {
    %c0_i32 = arith.constant 0 : i32
    %c0_i32_0 = arith.constant 0 : i32
    %c0_i32_1 = arith.constant 0 : i32
    return %c0_i32, %c0_i32_0 : i32, i32
  }
  func.func @transform_8(%arg0: i32) -> (i32, i32) {
    %c0_i32 = arith.constant 0 : i32
    %c0_i32_0 = arith.constant 0 : i32
    %c0_i32_1 = arith.constant 0 : i32
    return %c0_i32, %c0_i32_0 : i32, i32
  }
  func.func @transform_9(%arg0: i32) -> (i32, i32, i32) {
    %c0_i32 = arith.constant 0 : i32
    %c0_i32_0 = arith.constant 0 : i32
    %c0_i32_1 = arith.constant 0 : i32
    %c0_i32_2 = arith.constant 0 : i32
    return %c0_i32, %c0_i32_0, %c0_i32_1 : i32, i32, i32
  }
  func.func @transform_10(%arg0: i32) -> (i32, i32) {
    %c0_i32 = arith.constant 0 : i32
    %c0_i32_0 = arith.constant 0 : i32
    %c0_i32_1 = arith.constant 0 : i32
    return %c0_i32, %c0_i32_0 : i32, i32
  }
  func.func @transform_11(%arg0: i32) -> (i32, i32) {
    %c0_i32 = arith.constant 0 : i32
    %c0_i32_0 = arith.constant 0 : i32
    %c0_i32_1 = arith.constant 0 : i32
    return %c0_i32, %c0_i32_0 : i32, i32
  }
  func.func @transform_12(%arg0: i32) -> (i32, i32) {
    %c0_i32 = arith.constant 0 : i32
    %c0_i32_0 = arith.constant 0 : i32
    %c0_i32_1 = arith.constant 0 : i32
    return %c0_i32, %c0_i32_0 : i32, i32
  }
  func.func @transform_13(%arg0: i32) -> (i32, i32) {
    %c0_i32 = arith.constant 0 : i32
    %c0_i32_0 = arith.constant 0 : i32
    %c0_i32_1 = arith.constant 0 : i32
    return %c0_i32, %c0_i32_0 : i32, i32
  }
  func.func @transform_14(%arg0: i32) -> (i32, i32) {
    %c0_i32 = arith.constant 0 : i32
    %c0_i32_0 = arith.constant 0 : i32
    %c0_i32_1 = arith.constant 0 : i32
    return %c0_i32, %c0_i32_0 : i32, i32
  }
  func.func @transform_15(%arg0: i32) -> (i32, i32, i32) {
    %c0_i32 = arith.constant 0 : i32
    %c0_i32_0 = arith.constant 0 : i32
    %c0_i32_1 = arith.constant 0 : i32
    return %arg0, %c0_i32, %c0_i32_0 : i32, i32, i32
  }
}

</mosaic_0001>

<bundles_post_ra>
// kernel: lenet5_forward.1
= control target key start
LH: loop header
LB: loop body
LE: loop exit
PB: predicated region body
PF: predicated region fallthrough
CT: control target
= control target key end

     0   :  { %s5147_s0 = inlined_call_operand.vmem [shape: f32[2,32,128], index: 0, kind: input, shape index: {}]   ;;  %s5148_s1 = inlined_call_operand.hbm [shape: f32[5,128,256], index: 1, kind: input, shape index: {}]   ;;  %s5149_s2 = inlined_call_operand.vmem [shape: f32[1,256], index: 2, kind: input, shape index: {}]   ;;  %s5150_s3 = inlined_call_operand.vmem [shape: f32[14,28], index: 3, kind: input, shape index: {}]   ;;  %s5151_s4 = inlined_call_operand.hbm [shape: f32[256,128], index: 4, kind: input, shape index: {}]   ;;  %s5152_s5 = inlined_call_operand.hbm [shape: f32[5,128,256], index: 5, kind: input, shape index: {}]   ;;  %s5153_s6 = inlined_call_operand.vmem [shape: f32[1,256], index: 6, kind: input, shape index: {}]   ;;  %s5154_s7 = inlined_call_operand.vmem [shape: f32[5,10], index: 7, kind: input, shape index: {}]   ;;  %s5155_s8 = inlined_call_operand.hbm [shape: f32[256,128], index: 8, kind: input, shape index: {}]   ;;  %s5156_s9 = inlined_call_operand.vmem [shape: f32[5,128,128], index: 9, kind: input, shape index: {}]   ;;  %s5157_s10 = inlined_call_operand.vmem [shape: f32[1,128], index: 10, kind: input, shape index: {}]   ;;  %s5158_s11 = inlined_call_operand.vmem [shape: f32[128,128], index: 11, kind: input, shape index: {}]   ;;  %s5159_s12 = inlined_call_operand.vmem [shape: f32[1,128], index: 12, kind: input, shape index: {}]   ;;  %s5160_s13 = inlined_call_operand.hbm [shape: f32[128,128], index: 13, kind: input, shape index: {}]   ;;  %s5161_s14 = inlined_call_operand.vmem [shape: f32[1,128], index: 14, kind: input, shape index: {}]   ;;  %s5162_s15 = inlined_call_operand.vmem [shape: f32[2,8,128], index: 15, kind: output, shape index: {}]  }
   0x1   :  { %5168 = sst [smem:[#allocation14_spill]] %s5159_s12 }
   0x2   :  { %5169 = sst [smem:[#allocation15_spill]] %s5161_s14 }
   0x3   :  { %5170 = sst [smem:[#allocation16_spill]] %s5162_s15 }
   0x4   :  { %20 = vsyncpa [#allocation3], 0 }
   0x5   :  { %21 = vsyncpa [#allocation5], 0 }
   0x6   :  { %22 = vsyncpa [#allocation8], 0  ;;  %s4463_s18 = smov 0  }
   0x7 LB: > { %5171 = sst [smem:[#allocation13_spill]] %s4368_s18  ;;  %s4370_s19 = smov [#allocation4]   ;;  %s4368_s18 = sphi %s4463_s18, %s28_s18  }
   0x8   : > { %s410_s20 = sshll.u32 %s4370_s19, 4  ;;  %s4469_s21 = sadd.s32 4294967295, %s4368_s18   ;;  %s4474_s20 = int_to_ptr.vmem [resolvable:$true] %s410_s20 }
   0x9   : > { %p2972_p0 = scmp.ge.s32.totalorder %s4368_s18, 1  ;;  %p379_p1 = scmp.lt.s32.totalorder %s4368_s18, 3 }
   0xa   : > { %p5166_p2 = scmp.eq.s32.totalorder %s4469_s21, 0  ;;  %s4371_s23 = smov [#allocation7]  }
   0xb   : > { %p4476_p3 = pnand %p2972_p0, %p379_p1  ;;  %s442_s24 = sshll.u32 %s4371_s23, 4  ;;  %s4482_s24 = int_to_ptr.vmem [resolvable:$true] %s442_s24 }
   0xc   : > { %s4372_s26 = smov [#allocation2]   ;;  %s4210_s30 = scalar_lea.hbm %s5151_s4, 4096 }
   0xd   : > { %s5172_s22 = scalar_select %p4476_p3, 1, 0 }
   0xe   : > { %p4135_p4 = pneg %p4476_p3  ;;  %s391_s27 = sshll.u32 %s4372_s26, 4  ;;  %s4490_s27 = int_to_ptr.vmem [resolvable:$true] %s391_s27 }
   0xf   : > { %p4211_p6 = scmp.ne.s32.totalorder %s5151_s4, %s4210_s30  ;;  %p4217_p10 = scmp.lt.u32.totalorder %s4210_s30, %s5151_s4 }
  0x10   : > { %p4486_p5 = pnand %p5166_p2, %p4135_p4 }
  0x12   : > { %p4500_p7 = pneg %p4486_p5 }
  0x14   : > { %p4213_p8 = pnand %p4500_p7, %p4211_p6 }
  0x16   : > { %p4214_p9 = pneg %p4213_p8 }
  0x18   : > { %p4219_p11 = pnand %p4217_p10, %p4214_p9 }
  0x1a   : > { %4222 = shalt.err (!%p4219_p11)
}
  0x1b   : > { %s4223_s28 = scalar_lea.vmem %s4474_s20, 4096  ;;  %p4231_p1 = scmp.lt.s32.totalorder %s4474_s20, %s4474_s20 }
  0x1c   : > { %p4224_p12 = scmp.ne.s32.totalorder %s4474_s20, %s4223_s28  ;;  %p4232_p4 = scmp.lt.s32.totalorder %s4223_s28, %s4223_s28 }
  0x1e   : > { %p4226_p13 = pnand %p4224_p12, %p4500_p7  ;;  %p4233_p6 = por %p4232_p4, %p4231_p1 }
  0x20   : > { %p4227_p0 = pneg %p4226_p13 }
  0x22   : > { %p4234_p8 = pnand %p4233_p6, %p4227_p0 }
  0x24   : > { %4237 = shalt.err (!%p4234_p8)
}
  0x25   : > { %s5164_s29 = smov 128   ;;  %s5165_s30 = smov 8  }
  0x26   : > { %4141 = dma.hbm_to_vmem [thread:$0]  (!%p4486_p5), %s5151_s4, 4096, %s4474_s20, [#allocation5], %s5164_s29, %s5164_s29, %s5165_s30  }
  0x27   : > { %s4238_s28 = scalar_lea.hbm %s5155_s8, 4096 }
  0x28   : > { %p4239_p9 = scmp.ne.s32.totalorder %s5155_s8, %s4238_s28  ;;  %p4245_p12 = scmp.lt.u32.totalorder %s4238_s28, %s5155_s8 }
  0x2a   : > { %p4241_p10 = pnand %p4239_p9, %p4500_p7 }
  0x2c   : > { %p4242_p11 = pneg %p4241_p10 }
  0x2e   : > { %p4247_p13 = pnand %p4245_p12, %p4242_p11 }
  0x30   : > { %4250 = shalt.err (!%p4247_p13)
}
  0x31   : > { %s4251_s20 = scalar_lea.vmem %s4482_s24, 4096  ;;  %p4259_p6 = scmp.lt.s32.totalorder %s4482_s24, %s4482_s24 }
  0x32   : > { %p4252_p0 = scmp.ne.s32.totalorder %s4482_s24, %s4251_s20  ;;  %p4260_p8 = scmp.lt.s32.totalorder %s4251_s20, %s4251_s20 }
  0x34   : > { %p4254_p1 = pnand %p4252_p0, %p4500_p7  ;;  %p4261_p9 = por %p4260_p8, %p4259_p6 }
  0x36   : > { %p4255_p4 = pneg %p4254_p1 }
  0x38   : > { %p4262_p10 = pnand %p4261_p9, %p4255_p4 }
  0x3a   : > { %4265 = shalt.err (!%p4262_p10)
}
  0x3b   : > { %4147 = dma.hbm_to_vmem [thread:$0]  (!%p4486_p5), %s5155_s8, 4096, %s4482_s24, [#allocation8], %s5164_s29, %s5164_s29, %s5165_s30  }
  0x3c   : > { %s4266_s16 = scalar_lea.hbm %s5148_s1, 20480 }
  0x3d   : > { %p4267_p11 = scmp.ne.s32.totalorder %s5148_s1, %s4266_s16  ;;  %p4273_p0 = scmp.lt.u32.totalorder %s4266_s16, %s5148_s1 }
  0x3f   : > { %p4269_p12 = pnand %p4267_p11, %p4500_p7 }
  0x41   : > { %p4270_p13 = pneg %p4269_p12 }
  0x43   : > { %p4275_p1 = pnand %p4273_p0, %p4270_p13 }
  0x45   : > { %4278 = shalt.err (!%p4275_p1)
}
  0x46   : > { %s4279_s24 = scalar_lea.vmem %s4490_s27, 20480  ;;  %p4287_p9 = scmp.lt.s32.totalorder %s4490_s27, %s4490_s27 }
  0x47   : > { %p4280_p4 = scmp.ne.s32.totalorder %s4490_s27, %s4279_s24  ;;  %p4288_p10 = scmp.lt.s32.totalorder %s4279_s24, %s4279_s24 }
  0x49   : > { %p4282_p6 = pnand %p4280_p4, %p4500_p7  ;;  %p4289_p11 = por %p4288_p10, %p4287_p9 }
  0x4b   : > { %p4283_p8 = pneg %p4282_p6 }
  0x4d   : > { %p4290_p12 = pnand %p4289_p11, %p4283_p8 }
  0x4f   : > { %4293 = shalt.err (!%p4290_p12)
}
  0x50   : > { %s4375_s20 = smov 256   ;;  %s4376_s12 = smov 16  }
  0x51   : > { %4138 = dma.hbm_to_vmem [thread:$0]  (!%p4486_p5), %s5148_s1, 20480, %s4490_s27, [#allocation3], %s4375_s20, %s4375_s20, %s4376_s12  }
  0x52   : > { %s4377_s18 = smov [#allocation6]   ;;  %s4378_s17 = smov [#allocation9]  }
  0x53   : > { %s423_s16 = sshll.u32 %s4377_s18, 4  ;;  %s467_s23 = sshll.u32 %s4378_s17, 4  ;;  %s424_s16 = int_to_ptr.vmem [resolvable:$true] %s423_s16  ;;  %s4573_s23 = int_to_ptr.vmem [resolvable:$true] %s467_s23 }
  0x54   : > { %s4294_s24 = scalar_lea.hbm %s5152_s5, 20480 }
  0x55   : > { %p4295_p13 = scmp.ne.s32.totalorder %s5152_s5, %s4294_s24  ;;  %p4301_p4 = scmp.lt.u32.totalorder %s4294_s24, %s5152_s5 }
  0x57   : > { %p4297_p0 = pnand %p4295_p13, %p4500_p7 }
  0x59   : > { %p4298_p1 = pneg %p4297_p0 }
  0x5b   : > { %p4303_p6 = pnand %p4301_p4, %p4298_p1 }
  0x5d   : > { %4306 = shalt.err (!%p4303_p6)
}
  0x5e   : > { %s4307_s15 = scalar_lea.vmem %s424_s16, 20480  ;;  %p4315_p11 = scmp.lt.s32.totalorder %s424_s16, %s424_s16 }
  0x5f   : > { %p4308_p8 = scmp.ne.s32.totalorder %s424_s16, %s4307_s15  ;;  %p4316_p12 = scmp.lt.s32.totalorder %s4307_s15, %s4307_s15 }
  0x61   : > { %p4310_p9 = pnand %p4308_p8, %p4500_p7  ;;  %p4317_p2 = por %p4316_p12, %p4315_p11 }
  0x63   : > { %p4311_p10 = pneg %p4310_p9 }
  0x65   : > { %p4318_p3 = pnand %p4317_p2, %p4311_p10 }
  0x67   : > { %4321 = shalt.err (!%p4318_p3)
}
  0x68   : > { %4144 = dma.hbm_to_vmem [thread:$0]  (!%p4486_p5), %s5152_s5, 20480, %s424_s16, [#allocation5], %s4375_s20, %s4375_s20, %s4376_s12  }
  0x69   : > { %s4322_s26 = scalar_lea.hbm %s5160_s13, 2048 }
  0x6a   : > { %p4323_p13 = scmp.ne.s32.totalorder %s5160_s13, %s4322_s26  ;;  %p4329_p2 = scmp.lt.u32.totalorder %s4322_s26, %s5160_s13 }
  0x6c   : > { %p4325_p0 = pnand %p4323_p13, %p4500_p7 }
  0x6e   : > { %p4326_p1 = pneg %p4325_p0 }
  0x70   : > { %p4331_p3 = pnand %p4329_p2, %p4326_p1 }
  0x72   : > { %4334 = shalt.err (!%p4331_p3)
}
  0x73   : > { %s4335_s20 = scalar_lea.vmem %s4573_s23, 2048  ;;  %p4343_p9 = scmp.lt.s32.totalorder %s4573_s23, %s4573_s23 }
  0x74   : > { %p4336_p4 = scmp.ne.s32.totalorder %s4573_s23, %s4335_s20  ;;  %p4344_p10 = scmp.lt.s32.totalorder %s4335_s20, %s4335_s20 }
  0x76   : > { %p4338_p6 = pnand %p4336_p4, %p4500_p7  ;;  %p4345_p11 = por %p4344_p10, %p4343_p9 }
  0x78   : > { %p4339_p8 = pneg %p4338_p6 }
  0x7a   : > { %p4346_p12 = pnand %p4345_p11, %p4339_p8 }
  0x7c   : > { %4349 = shalt.err (!%p4346_p12)
}
  0x7d   : > { %s5175_s12 = smov 8   ;;  %s5176_s16 = smov 128  }
  0x7e   : > { %4150 = dma.hbm_to_vmem [thread:$0]  (!%p4486_p5), %s5160_s13, 2048, %s4573_s23, [#allocation8], %s5176_s16, %s5176_s16, %s5175_s12  }
  0x7f   : > { %p5177_p13 = scmp.ne.s32.totalorder %s5172_s22, 0 }
  0x80   : > { %p5178_p7 = scmp.eq.s32.totalorder (!%p5177_p13), %s4469_s21, 0 }
  0x81   : > { %494 = sbr.rel (%p5177_p13) target bundleno = 2515 (0x9d3), region = 80 }
  0x88   : > { %4355 = dma.done.wait (%p5178_p7), [#allocation3], 20480   ;;  %p5179_p0 = pmov %p5178_p7 }
  0x8a   : > { %4357 = vsyncadd (%p5179_p0), [#allocation3], 4294946816  ;;  %p5180_p1 = pmov %p5179_p0 }
  0x8b   : > { %p5181_p2 = pmov %p5179_p0 }
  0x8c   : > { %4359 = dma.done.wait (%p5180_p1), [#allocation5], 24576  }
  0x8d   : > { %4361 = vsyncadd (%p5181_p2), [#allocation5], 4294942720  ;;  %p5182_p3 = pmov %p5179_p0 }
  0x8e   : > { %p5183_p5 = pmov %p5179_p0 }
  0x8f   : > { %4363 = dma.done.wait (%p5182_p3), [#allocation8], 6144  }
  0x90   : > { %4365 = vsyncadd (%p5183_p5), [#allocation8], 4294961152  ;;  %v4379_v0 = vmov 0.0   ;;  %v608_v1 = vld [vmem:[#allocation2 + $0x108] sm:$0xff]  ;;  %v610_v2 = vld [vmem:[#allocation2 + $0x118] sm:$0xff]  ;;  %p557_p4 = scmp.lt.s32.totalorder %s4469_s21, 1 }
  0x91   : > { %703 = vmatprep.mubr.f32.mxu0 %v4379_v0  ;;  %v607_v3 = vld [vmem:[#allocation2 + $0x100] sm:$0xff]  ;;  %v3499_v4 = vpack.c.bf16 %v610_v2, %v608_v1  ;;  %v609_v5 = vld [vmem:[#allocation2 + $0x110] sm:$0xff]  ;;  %v612_v6 = vld [vmem:[#allocation2 + $0x128] sm:$0xff]  ;;  %vm1256_vm0 = vcmask 1043456   ;;  %vm4380_vm1 = vmmov 1   ;;  %vm1249_vm3 = vcmask 228352  }
  0x92   : > { %v614_v7 = vld [vmem:[#allocation2 + $0x138] sm:$0xff]  ;;  %v3501_v8 = vpack.c.bf16 %v609_v5, %v607_v3  ;;  %v611_v10 = vld [vmem:[#allocation2 + $0x120] sm:$0xff]  ;;  %v613_v11 = vld [vmem:[#allocation2 + $0x130] sm:$0xff]  ;;  %s5189_s21 = smov (!%p557_p4, %s4469_s21), 1  ;;  %vm1514_vm4 = vcmask 1046528   ;;  %vm1707_vm5 = vcmask 1045504  }
  0x93   : > { %v3503_v9 = vpack.c.bf16 %v614_v7, %v612_v6  ;;  %v616_v12 = vld [vmem:[#allocation2 + $0x148] sm:$0xff]  ;;  %3500 = vmatprep.subr.bf16.mxu0 %v3499_v4  ;;  %v618_v13 = vld [vmem:[#allocation2 + $0x158] sm:$0xff]  ;;  %v3505_v14 = vpack.c.bf16 %v613_v11, %v611_v10  ;;  %v615_v16 = vld [vmem:[#allocation2 + $0x140] sm:$0xff]  ;;  %s3061_s22 = sshll.u32 %s5189_s21, 5  ;;  %vm1827_vm6 = vcmask 1044480   ;;  %vm2058_vm7 = vcmask 1041408  }
  0x94   : > { %3502 = vmatpush1.bf16.msra.mxu0 %v3501_v8  ;;  %v3507_v15 = vpack.c.bf16 %v618_v13, %v616_v12  ;;  %v617_v17 = vld [vmem:[#allocation2 + $0x150] sm:$0xff]  ;;  %v620_v18 = vld [vmem:[#allocation2 + $0x168] sm:$0xff]  ;;  %v622_v19 = vld [vmem:[#allocation2 + $0x178] sm:$0xff]  ;;  %s4642_s23 = scalar_lea.vmem %s5147_s0, %s3061_s22  ;;  %vm2054_vm9 = vcmask 80896   ;;  %vm4382_vm10 = vmmov 0   ;;  %s5184_s17 = sld [smem:[#allocation14_spill]] }
  0x95   : > { %3504 = vmatprep.subr.bf16.mxu0 %v3503_v9  ;;  %v3509_v20 = vpack.c.bf16 %v617_v17, %v615_v16  ;;  %v3511_v21 = vpack.c.bf16 %v622_v19, %v620_v18  ;;  %v619_v22 = vld [vmem:[#allocation2 + $0x160] sm:$0xff]  ;;  %v621_v23 = vld [vmem:[#allocation2 + $0x170] sm:$0xff]  ;;  %v624_v24 = vld [vmem:[#allocation2 + $0x188] sm:$0xff]  ;;  %s5185_s24 = sld [smem:[#allocation15_spill]]  ;;  %s2987_s14 = sshll.u32 %s5189_s21, 3 }
  0x96   : > { %v626_v25 = vld [vmem:[#allocation2 + $0x198] sm:$0xff]  ;;  %v3513_v26 = vpack.c.bf16 %v621_v23, %v619_v22  ;;  %v623_v28 = vld [vmem:[#allocation2 + $0x180] sm:$0xff]  ;;  %v625_v29 = vld [vmem:[#allocation2 + $0x190] sm:$0xff]  ;;  %s5186_s12 = sld [smem:[#allocation16_spill]] }
  0x97   : > { %v3515_v27 = vpack.c.bf16 %v626_v25, %v624_v24  ;;  %v628_v30 = vld [vmem:[#allocation2 + $0x1a8] sm:$0xff]  ;;  %v630_v31 = vld [vmem:[#allocation2 + $0x1b8] sm:$0xff]  ;;  %v3517_v32 = vpack.c.bf16 %v625_v29, %v623_v28  ;;  %v627_v34 = vld [vmem:[#allocation2 + $0x1a0] sm:$0xff] }
  0x98   : > { %3506 = vmatpush1.bf16.msra.mxu0 %v3505_v14  ;;  %v3519_v33 = vpack.c.bf16 %v630_v31, %v628_v30  ;;  %v629_v35 = vld [vmem:[#allocation2 + $0x1b0] sm:$0xff]  ;;  %v632_v36 = vld [vmem:[#allocation2 + $0x1c8] sm:$0xff]  ;;  %v634_v37 = vld [vmem:[#allocation2 + $0x1d8] sm:$0xff] }
  0x99   : > { %3508 = vmatprep.subr.bf16.mxu0 %v3507_v15  ;;  %v3521_v38 = vpack.c.bf16 %v629_v35, %v627_v34  ;;  %v3523_v39 = vpack.c.bf16 %v634_v37, %v632_v36  ;;  %v631_v40 = vld [vmem:[#allocation2 + $0x1c0] sm:$0xff]  ;;  %v633_v41 = vld [vmem:[#allocation2 + $0x1d0] sm:$0xff]  ;;  %v636_v42 = vld [vmem:[#allocation2 + $0x1e8] sm:$0xff] }
  0x9a   : > { %v638_v43 = vld [vmem:[#allocation2 + $0x1f8] sm:$0xff]  ;;  %v3525_v44 = vpack.c.bf16 %v633_v41, %v631_v40  ;;  %v635_v46 = vld [vmem:[#allocation2 + $0x1e0] sm:$0xff]  ;;  %v637_v47 = vld [vmem:[#allocation2 + $0x1f0] sm:$0xff] }
  0x9b   : > { %v3527_v45 = vpack.c.bf16 %v638_v43, %v636_v42  ;;  %v571_v48 = vld [vmem:[#allocation2 + $0x8] sm:$0xff]  ;;  %v573_v49 = vld [vmem:[#allocation2 + $0x18] sm:$0xff]  ;;  %v3529_v50 = vpack.c.bf16 %v637_v47, %v635_v46  ;;  %v570_v52 = vld [vmem:[#allocation2] sm:$0xff] }
  0x9c   : > { %3510 = vmatpush1.bf16.msra.mxu0 %v3509_v20  ;;  %v3531_v51 = vpack.c.bf16 %v573_v49, %v571_v48  ;;  %v572_v53 = vld [vmem:[#allocation2 + $0x10] sm:$0xff]  ;;  %v575_v54 = vld [vmem:[#allocation2 + $0x28] sm:$0xff]  ;;  %v577_v55 = vld [vmem:[#allocation2 + $0x38] sm:$0xff]  ;;  %s565_s16 = scalar_lea.vmem %s5186_s12, %s2987_s14 }
  0x9d   : > { %3512 = vmatprep.subr.bf16.mxu0 %v3511_v21  ;;  %v602_v56 = vld [vmem:[%s4642_s23 + $0x1] sm:$0xff]  ;;  %v3533_v57 = vpack.c.bf16 %v572_v53, %v570_v52  ;;  %v3535_v58 = vpack.c.bf16 %v577_v55, %v575_v54  ;;  %v576_v60 = vld [vmem:[#allocation2 + $0x30] sm:$0xff]  ;;  %v581_v62 = vld [vmem:[#allocation2 + $0x58] sm:$0xff] }
  0x9e   : > { %v574_v59 = vld [vmem:[#allocation2 + $0x20] sm:$0xff]  ;;  %v579_v61 = vld [vmem:[#allocation2 + $0x48] sm:$0xff]  ;;  %v580_v4 = vld [vmem:[#allocation2 + $0x50] sm:$0xff] }
  0x9f   : > { %v3537_v63 = vpack.c.bf16 %v576_v60, %v574_v59  ;;  %v603_v1 = vld [vmem:[%s4642_s23 + $0x9] sm:$0xff]  ;;  %v3539_v2 = vpack.c.bf16 %v581_v62, %v579_v61  ;;  %v578_v3 = vld [vmem:[#allocation2 + $0x40] sm:$0xff]  ;;  %v585_v6 = vld [vmem:[#allocation2 + $0x78] sm:$0xff] }
  0xa0   : > { %3514 = vmatpush1.bf16.msra.mxu0 %v3513_v26  ;;  %v583_v5 = vld [vmem:[#allocation2 + $0x68] sm:$0xff]  ;;  %v3541_v7 = vpack.c.bf16 %v580_v4, %v578_v3  ;;  %v604_v8 = vld [vmem:[%s4642_s23 + $0x11] sm:$0xff]  ;;  %v582_v10 = vld [vmem:[#allocation2 + $0x60] sm:$0xff] }
  0xa1   : > { %3516 = vmatprep.subr.bf16.mxu0 %v3515_v27  ;;  %v3543_v9 = vpack.c.bf16 %v585_v6, %v583_v5  ;;  %v584_v11 = vld [vmem:[#allocation2 + $0x70] sm:$0xff]  ;;  %v587_v12 = vld [vmem:[#allocation2 + $0x88] sm:$0xff]  ;;  %v589_v13 = vld [vmem:[#allocation2 + $0x98] sm:$0xff] }
  0xa2   : > { %v3545_v14 = vpack.c.bf16 %v584_v11, %v582_v10  ;;  %v605_v15 = vld [vmem:[%s4642_s23 + $0x19] sm:$0xf]  ;;  %v3547_v16 = vpack.c.bf16 %v589_v13, %v587_v12  ;;  %v586_v17 = vld [vmem:[#allocation2 + $0x80] sm:$0xff]  ;;  %v588_v18 = vld [vmem:[#allocation2 + $0x90] sm:$0xff] }
  0xa3   : > { %v591_v19 = vld [vmem:[#allocation2 + $0xa8] sm:$0xff]  ;;  %v593_v20 = vld [vmem:[#allocation2 + $0xb8] sm:$0xff]  ;;  %v3549_v21 = vpack.c.bf16 %v588_v18, %v586_v17  ;;  %v590_v23 = vld [vmem:[#allocation2 + $0xa0] sm:$0xff] }
  0xa4   : > { %3518 = vmatpush1.bf16.msra.mxu0 %v3517_v32  ;;  %v3551_v22 = vpack.c.bf16 %v593_v20, %v591_v19  ;;  %v592_v24 = vld [vmem:[#allocation2 + $0xb0] sm:$0xff]  ;;  %v595_v25 = vld [vmem:[#allocation2 + $0xc8] sm:$0xff]  ;;  %v597_v26 = vld [vmem:[#allocation2 + $0xd8] sm:$0xff] }
  0xa5   : > { %3520 = vmatprep.subr.bf16.mxu0 %v3519_v33  ;;  %v3553_v27 = vpack.c.bf16 %v592_v24, %v590_v23  ;;  %v3555_v28 = vpack.c.bf16 %v597_v26, %v595_v25  ;;  %v594_v29 = vld [vmem:[#allocation2 + $0xc0] sm:$0xff]  ;;  %v596_v30 = vld [vmem:[#allocation2 + $0xd0] sm:$0xff]  ;;  %v599_v31 = vld [vmem:[#allocation2 + $0xe8] sm:$0xff] }
  0xa6   : > { %v601_v32 = vld [vmem:[#allocation2 + $0xf8] sm:$0xff]  ;;  %v3557_v33 = vpack.c.bf16 %v596_v30, %v594_v29  ;;  %v598_v35 = vld [vmem:[#allocation2 + $0xe0] sm:$0xff]  ;;  %v600_v36 = vld [vmem:[#allocation2 + $0xf0] sm:$0xff] }
  0xa7   : > { %v3559_v34 = vpack.c.bf16 %v601_v32, %v599_v31  ;;  %v823_v37 = vld [vmem:[#allocation2 + $0x208] sm:$0xff]  ;;  %v822_v41 = vld [vmem:[#allocation2 + $0x200] sm:$0xff]  ;;  %v824_v42 = vld [vmem:[#allocation2 + $0x210] sm:$0xff] }
  0xa8   : > { %3522 = vmatpush1.bf16.msra.mxu0 %v3521_v38  ;;  %v825_v38 = vld [vmem:[#allocation2 + $0x218] sm:$0xff]  ;;  %v827_v43 = vld [vmem:[#allocation2 + $0x228] sm:$0xff]  ;;  %v3565_v46 = vpack.c.bf16 %v824_v42, %v822_v41  ;;  %v826_v48 = vld [vmem:[#allocation2 + $0x220] sm:$0xff] }
  0xa9   : > { %3524 = vmatprep.subr.bf16.mxu0 %v3523_v39  ;;  %v3561_v39 = vpack.c.bf16 %v600_v36, %v598_v35  ;;  %v3563_v40 = vpack.c.bf16 %v825_v38, %v823_v37  ;;  %v828_v49 = vld [vmem:[#allocation2 + $0x230] sm:$0xff]  ;;  %v567_v53 = vld [vmem:[%s4642_s23 + $0x8] sm:$0xff]  ;;  %v830_v55 = vld [vmem:[#allocation2 + $0x240] sm:$0xff] }
  0xaa   : > { %v3569_v52 = vpack.c.bf16 %v828_v49, %v826_v48  ;;  %v568_v60 = vld [vmem:[%s4642_s23 + $0x10] sm:$0xff]  ;;  %v834_v62 = vld [vmem:[#allocation2 + $0x260] sm:$0xff]  ;;  %v569_v4 = vld [vmem:[%s4642_s23 + $0x18] sm:$0xf] }
  0xab   : > { %v838_v6 = vld [vmem:[#allocation2 + $0x280] sm:$0xff]  ;;  %v844_v13 = vld [vmem:[#allocation2 + $0x2b0] sm:$0xff]  ;;  %v851_v20 = vld [vmem:[#allocation2 + $0x2e8] sm:$0xff] }
  0xac   : > { %3526 = vmatpush1.bf16.msra.mxu0 %v3525_v44  ;;  %v829_v44 = vld [vmem:[#allocation2 + $0x238] sm:$0xff]  ;;  %v842_v12 = vld [vmem:[#allocation2 + $0x2a0] sm:$0xff]  ;;  %v848_v19 = vld [vmem:[#allocation2 + $0x2d0] sm:$0xff] }
  0xad   : > { %3528 = vmatprep.subr.bf16.mxu0 %v3527_v45  ;;  %v566_v45 = vld [vmem:[%s4642_s23] sm:$0xff]  ;;  %v3567_v47 = vpack.c.bf16 %v829_v44, %v827_v43  ;;  %v852_v25 = vld [vmem:[#allocation2 + $0x2f0] sm:$0xff]  ;;  %v957_v26 = vld [vmem:[#allocation2 + $0x308] sm:$0xff] }
  0xae   : > { %v846_v18 = vld [vmem:[#allocation2 + $0x2c0] sm:$0xff]  ;;  %v958_v31 = vld [vmem:[#allocation2 + $0x310] sm:$0xff]  ;;  %v961_v32 = vld [vmem:[#allocation2 + $0x328] sm:$0xff] }
  0xaf   : > { %v850_v24 = vld [vmem:[#allocation2 + $0x2e0] sm:$0xff]  ;;  %v962_v38 = vld [vmem:[#allocation2 + $0x330] sm:$0xff]  ;;  %vm3664_vm2 = vmpackc.low %vm1256_vm0, %vm4380_vm1 }
  0xb0   : > { %3530 = vmatpush1.bf16.msra.mxu0 %v3529_v50  ;;  %v831_v50 = vld [vmem:[#allocation2 + $0x248] sm:$0xff]  ;;  %v956_v30 = vld [vmem:[#allocation2 + $0x300] sm:$0xff]  ;;  %v819_v49 = vld [vmem:[%s4642_s23 + $0x12] sm:$0xff] }
  0xb1   : > { %3532 = vmatprep.subr.bf16.mxu0 %v3531_v51  ;;  %v833_v51 = vld [vmem:[#allocation2 + $0x258] sm:$0xff]  ;;  %v3597_v35 = vpack.c.bf16 %v958_v31, %v956_v30  ;;  %v960_v37 = vld [vmem:[#allocation2 + $0x320] sm:$0xff]  ;;  %v818_v42 = vld [vmem:[%s4642_s23 + $0xa] sm:$0xff] }
  0xb2   : > { %v3571_v54 = vpack.c.bf16 %v833_v51, %v831_v50  ;;  %v3601_v41 = vpack.c.bf16 %v962_v38, %v960_v37  ;;  %v964_v44 = vld [vmem:[#allocation2 + $0x340] sm:$0xff]  ;;  %v952_v31 = vld [vmem:[%s4642_s23 + $0xb] sm:$0xff]  ;;  %v953_v38 = vld [vmem:[%s4642_s23 + $0x13] sm:$0xff] }
  0xb3   : > { %704 = vmatmul.mubr.f32.vlgmr.msra.gmra.mrb[0].mxu0 %v602_v56  ;;  %v832_v56 = vld [vmem:[#allocation2 + $0x250] sm:$0xff]  ;;  %v968_v51 = vld [vmem:[#allocation2 + $0x360] sm:$0xff]  ;;  %vm3862_vm8 = vmpackc.low %vm2058_vm7, %vm4380_vm1 }
  0xb4   : > { %3534 = vmatpush1.bf16.msra.mxu0 %v3533_v57  ;;  %709 = vmatprep.mubr.f32.mxu0 %v4379_v0  ;;  %v835_v57 = vld [vmem:[#allocation2 + $0x268] sm:$0xff]  ;;  %v3573_v59 = vpack.c.bf16 %v832_v56, %v830_v55  ;;  %v820_v56 = vld [vmem:[%s4642_s23 + $0x1a] sm:$0xf] }
  0xb5   : > { %3536 = vmatprep.subr.bf16.mxu0 %v3535_v58  ;;  %v837_v58 = vld [vmem:[#allocation2 + $0x278] sm:$0xff] }
  0xb6   : > { %v3575_v61 = vpack.c.bf16 %v837_v58, %v835_v57  ;;  %v972_v58 = vld [vmem:[#allocation2 + $0x380] sm:$0xff] }
  0xb7   : > { %710 = vmatmul.mubr.f32.gmra.mrb[2].mxu0 %v603_v1  ;;  %v839_v1 = vld [vmem:[#allocation2 + $0x288] sm:$0xff] }
  0xb8   : > { %3538 = vmatpush1.bf16.msra.mxu0 %v3537_v63  ;;  %715 = vmatprep.mubr.f32.mxu0 %v4379_v0  ;;  %v836_v63 = vld [vmem:[#allocation2 + $0x270] sm:$0xff] }
  0xb9   : > { %3540 = vmatprep.subr.bf16.mxu0 %v3539_v2  ;;  %v841_v2 = vld [vmem:[#allocation2 + $0x298] sm:$0xff]  ;;  %v3577_v3 = vpack.c.bf16 %v836_v63, %v834_v62 }
  0xba   : > { %v3579_v5 = vpack.c.bf16 %v841_v2, %v839_v1  ;;  %v976_v1 = vld [vmem:[#allocation2 + $0x3a0] sm:$0xff]  ;;  %v978_v2 = vld [vmem:[#allocation2 + $0x3b0] sm:$0xff] }
  0xbb   : > { %716 = vmatmul.mubr.f32.gmra.mrb[4].mxu0 %v604_v8  ;;  %v843_v8 = vld [vmem:[#allocation2 + $0x2a8] sm:$0xff] }
  0xbc   : > { %3542 = vmatpush1.bf16.msra.mxu0 %v3541_v7  ;;  %721 = vmatprep.mubr.f32.mxu0 %v4379_v0  ;;  %v840_v7 = vld [vmem:[#allocation2 + $0x290] sm:$0xff] }
  0xbd   : > { %3544 = vmatprep.subr.bf16.mxu0 %v3543_v9  ;;  %v845_v9 = vld [vmem:[#allocation2 + $0x2b8] sm:$0xff]  ;;  %v3581_v10 = vpack.c.bf16 %v840_v7, %v838_v6  ;;  %v980_v7 = vld [vmem:[#allocation2 + $0x3c0] sm:$0xff] }
  0xbe   : > { %v3583_v11 = vpack.c.bf16 %v845_v9, %v843_v8  ;;  %v982_v8 = vld [vmem:[#allocation2 + $0x3d0] sm:$0xff]  ;;  %v985_v9 = vld [vmem:[#allocation2 + $0x3e8] sm:$0xff] }
  0xbf   : > { %722 = vmatmul.mubr.f32.gmra.mrb[6].mxu0 %v605_v15  ;;  %v849_v15 = vld [vmem:[#allocation2 + $0x2d8] sm:$0xff] }
  0xc0   : > { %3546 = vmatpush1.bf16.msra.mxu0 %v3545_v14  ;;  %792 = vmatprep.mubr.f32.mxu0 %v4379_v0  ;;  %v847_v14 = vld [vmem:[#allocation2 + $0x2c8] sm:$0xff] }
  0xc1   : > { %3548 = vmatprep.subr.bf16.mxu0 %v3547_v16  ;;  %v3585_v16 = vpack.c.bf16 %v844_v13, %v842_v12  ;;  %v3587_v17 = vpack.c.bf16 %v849_v15, %v847_v14  ;;  %v984_v13 = vld [vmem:[#allocation2 + $0x3e0] sm:$0xff]  ;;  %v986_v14 = vld [vmem:[#allocation2 + $0x3f0] sm:$0xff]  ;;  %v1091_v15 = vld [vmem:[#allocation2 + $0x408] sm:$0xff] }
  0xc4   : > { %3550 = vmatpush1.bf16.msra.mxu0 %v3549_v21  ;;  %v853_v21 = vld [vmem:[#allocation2 + $0x2f8] sm:$0xff] }
  0xc5   : > { %3552 = vmatprep.subr.bf16.mxu0 %v3551_v22  ;;  %v3589_v22 = vpack.c.bf16 %v848_v19, %v846_v18  ;;  %v3591_v23 = vpack.c.bf16 %v853_v21, %v851_v20  ;;  %v1090_v19 = vld [vmem:[#allocation2 + $0x400] sm:$0xff]  ;;  %v1092_v20 = vld [vmem:[#allocation2 + $0x410] sm:$0xff]  ;;  %v1095_v21 = vld [vmem:[#allocation2 + $0x428] sm:$0xff] }
  0xc8   : > { %3554 = vmatpush1.bf16.msra.mxu0 %v3553_v27  ;;  %v959_v27 = vld [vmem:[#allocation2 + $0x318] sm:$0xff] }
  0xc9   : > { %3556 = vmatprep.subr.bf16.mxu0 %v3555_v28  ;;  %v3593_v28 = vpack.c.bf16 %v852_v25, %v850_v24  ;;  %v3595_v29 = vpack.c.bf16 %v959_v27, %v957_v26  ;;  %v3629_v24 = vpack.c.bf16 %v1092_v20, %v1090_v19  ;;  %v1094_v26 = vld [vmem:[#allocation2 + $0x420] sm:$0xff]  ;;  %v1096_v27 = vld [vmem:[#allocation2 + $0x430] sm:$0xff]  ;;  %v1343_v19 = vld [vmem:[#allocation4 + $0x18] sm:$0xff] }
  0xca   : > { %v3633_v30 = vpack.c.bf16 %v1096_v27, %v1094_v26  ;;  %v1360_v20 = vld [vmem:[#allocation4 + $0xa0] sm:$0xff]  ;;  %v1362_v26 = vld [vmem:[#allocation4 + $0xb0] sm:$0xff]  ;;  %v1363_v27 = vld [vmem:[#allocation4 + $0xb8] sm:$0xff] }
  0xcc   : > { %3558 = vmatpush1.bf16.msra.mxu0 %v3557_v33  ;;  %v963_v33 = vld [vmem:[#allocation2 + $0x338] sm:$0xff] }
  0xcd   : > { %3560 = vmatprep.subr.bf16.mxu0 %v3559_v34  ;;  %v817_v34 = vld [vmem:[%s4642_s23 + $0x2] sm:$0xff]  ;;  %v3599_v36 = vpack.c.bf16 %v963_v33, %v961_v32 }
  0xce   : > { %v1098_v33 = vld [vmem:[#allocation2 + $0x440] sm:$0xff] }
  0xd0   : > { %3562 = vmatpush1.bf16.msra.mxu0 %v3561_v39  ;;  %v965_v39 = vld [vmem:[#allocation2 + $0x348] sm:$0xff] }
  0xd1   : > { %3564 = vmatprep.subr.bf16.mxu0 %v3563_v40  ;;  %v967_v40 = vld [vmem:[#allocation2 + $0x358] sm:$0xff] }
  0xd2   : > { %v3603_v43 = vpack.c.bf16 %v967_v40, %v965_v39  ;;  %v1102_v40 = vld [vmem:[#allocation2 + $0x460] sm:$0xff] }
  0xd3   : > { %793 = vmatmul.mubr.f32.vlgmr.msra.gmra.mrb[0].mxu0 %v566_v45  ;;  %v966_v45 = vld [vmem:[#allocation2 + $0x350] sm:$0xff] }
  0xd4   : > { %3566 = vmatpush1.bf16.msra.mxu0 %v3565_v46  ;;  %798 = vmatprep.mubr.f32.mxu0 %v4379_v0  ;;  %v969_v46 = vld [vmem:[#allocation2 + $0x368] sm:$0xff]  ;;  %v3605_v48 = vpack.c.bf16 %v966_v45, %v964_v44  ;;  %v954_v45 = vld [vmem:[%s4642_s23 + $0x1b] sm:$0xf] }
  0xd5   : > { %3568 = vmatprep.subr.bf16.mxu0 %v3567_v47  ;;  %v971_v47 = vld [vmem:[#allocation2 + $0x378] sm:$0xff] }
  0xd6   : > { %v3607_v50 = vpack.c.bf16 %v971_v47, %v969_v46  ;;  %v1106_v47 = vld [vmem:[#allocation2 + $0x480] sm:$0xff] }
  0xd7   : > { %799 = vmatmul.mubr.f32.gmra.mrb[2].mxu0 %v567_v53  ;;  %v973_v53 = vld [vmem:[#allocation2 + $0x388] sm:$0xff] }
  0xd8   : > { %3570 = vmatpush1.bf16.msra.mxu0 %v3569_v52  ;;  %804 = vmatprep.mubr.f32.mxu0 %v4379_v0  ;;  %v970_v52 = vld [vmem:[#allocation2 + $0x370] sm:$0xff] }
  0xd9   : > { %3572 = vmatprep.subr.bf16.mxu0 %v3571_v54  ;;  %v975_v54 = vld [vmem:[#allocation2 + $0x398] sm:$0xff]  ;;  %v3609_v55 = vpack.c.bf16 %v970_v52, %v968_v51 }
  0xda   : > { %v3611_v57 = vpack.c.bf16 %v975_v54, %v973_v53  ;;  %v1110_v53 = vld [vmem:[#allocation2 + $0x4a0] sm:$0xff]  ;;  %v1112_v54 = vld [vmem:[#allocation2 + $0x4b0] sm:$0xff] }
  0xdb   : > { %805 = vmatmul.mubr.f32.gmra.mrb[4].mxu0 %v568_v60  ;;  %v977_v60 = vld [vmem:[#allocation2 + $0x3a8] sm:$0xff] }
  0xdc   : > { %3574 = vmatpush1.bf16.msra.mxu0 %v3573_v59  ;;  %810 = vmatprep.mubr.f32.mxu0 %v4379_v0  ;;  %v974_v59 = vld [vmem:[#allocation2 + $0x390] sm:$0xff] }
  0xdd   : > { %3576 = vmatprep.subr.bf16.mxu0 %v3575_v61  ;;  %v979_v61 = vld [vmem:[#allocation2 + $0x3b8] sm:$0xff]  ;;  %v3613_v62 = vpack.c.bf16 %v974_v59, %v972_v58  ;;  %v1114_v59 = vld [vmem:[#allocation2 + $0x4c0] sm:$0xff] }
  0xde   : > { %v3615_v63 = vpack.c.bf16 %v979_v61, %v977_v60  ;;  %v1116_v60 = vld [vmem:[#allocation2 + $0x4d0] sm:$0xff]  ;;  %v1119_v61 = vld [vmem:[#allocation2 + $0x4e8] sm:$0xff] }
  0xdf   : > { %811 = vmatmul.mubr.f32.gmra.mrb[6].mxu0 %v569_v4  ;;  %v983_v4 = vld [vmem:[#allocation2 + $0x3d8] sm:$0xff] }
  0xe0   : > { %3578 = vmatpush1.bf16.msra.mxu0 %v3577_v3  ;;  %918 = vmatprep.mubr.f32.mxu0 %v4379_v0  ;;  %v981_v3 = vld [vmem:[#allocation2 + $0x3c8] sm:$0xff] }
  0xe1   : > { %3580 = vmatprep.subr.bf16.mxu0 %v3579_v5  ;;  %v3617_v5 = vpack.c.bf16 %v978_v2, %v976_v1  ;;  %v3619_v6 = vpack.c.bf16 %v983_v4, %v981_v3  ;;  %v1118_v2 = vld [vmem:[#allocation2 + $0x4e0] sm:$0xff]  ;;  %v1120_v3 = vld [vmem:[#allocation2 + $0x4f0] sm:$0xff] }
  0xe2   : > { %v3657_v4 = vpack.c.bf16 %v1120_v3, %v1118_v2 }
  0xe4   : > { %3582 = vmatpush1.bf16.msra.mxu0 %v3581_v10  ;;  %v987_v10 = vld [vmem:[#allocation2 + $0x3f8] sm:$0xff] }
  0xe5   : > { %3584 = vmatprep.subr.bf16.mxu0 %v3583_v11  ;;  %v3621_v11 = vpack.c.bf16 %v982_v8, %v980_v7  ;;  %v3623_v12 = vpack.c.bf16 %v987_v10, %v985_v9  ;;  %v1087_v7 = vld [vmem:[%s4642_s23 + $0x14] sm:$0xff]  ;;  %v1088_v8 = vld [vmem:[%s4642_s23 + $0x1c] sm:$0xf]  ;;  %v1356_v9 = vld [vmem:[#allocation4 + $0x80] sm:$0xff] }
  0xe6   : > { %v1357_v10 = vld [vmem:[#allocation4 + $0x88] sm:$0xff] }
  0xe8   : > { %3586 = vmatpush1.bf16.msra.mxu0 %v3585_v16  ;;  %v1093_v16 = vld [vmem:[#allocation2 + $0x418] sm:$0xff] }
  0xe9   : > { %3588 = vmatprep.subr.bf16.mxu0 %v3587_v17  ;;  %v3625_v17 = vpack.c.bf16 %v986_v14, %v984_v13  ;;  %v3627_v18 = vpack.c.bf16 %v1093_v16, %v1091_v15  ;;  %v1341_v13 = vld [vmem:[#allocation4 + $0x8] sm:$0xff]  ;;  %v1358_v14 = vld [vmem:[#allocation4 + $0x90] sm:$0xff]  ;;  %v1359_v15 = vld [vmem:[#allocation4 + $0x98] sm:$0xff] }
  0xec   : > { %3590 = vmatpush1.bf16.msra.mxu0 %v3589_v22  ;;  %v1097_v22 = vld [vmem:[#allocation2 + $0x438] sm:$0xff] }
  0xed   : > { %3592 = vmatprep.subr.bf16.mxu0 %v3591_v23  ;;  %v951_v23 = vld [vmem:[%s4642_s23 + $0x3] sm:$0xff]  ;;  %v3631_v25 = vpack.c.bf16 %v1097_v22, %v1095_v21 }
  0xee   : > { %v1361_v21 = vld [vmem:[#allocation4 + $0xa8] sm:$0xff] }
  0xf0   : > { %3594 = vmatpush1.bf16.msra.mxu0 %v3593_v28  ;;  %v1099_v28 = vld [vmem:[#allocation2 + $0x448] sm:$0xff] }
  0xf1   : > { %3596 = vmatprep.subr.bf16.mxu0 %v3595_v29  ;;  %v1101_v29 = vld [vmem:[#allocation2 + $0x458] sm:$0xff] }
  0xf2   : > { %v3635_v32 = vpack.c.bf16 %v1101_v29, %v1099_v28  ;;  %v3681_v29 = vpack.c.bf16 %v1363_v27, %v1362_v26  ;;  %v1247_v26 = vld [vmem:[%s5150_s3] sm:$0xff]  ;;  %v1248_v27 = vld [vmem:[%s5150_s3 + $0x8] sm:$0x3f] }
  0xf3   : > { %919 = vmatmul.mubr.f32.vlgmr.msra.gmra.mrb[0].mxu0 %v817_v34  ;;  %v1100_v34 = vld [vmem:[#allocation2 + $0x450] sm:$0xff] }
  0xf4   : > { %3598 = vmatpush1.bf16.msra.mxu0 %v3597_v35  ;;  %924 = vmatprep.mubr.f32.mxu0 %v4379_v0  ;;  %v1103_v35 = vld [vmem:[#allocation2 + $0x468] sm:$0xff]  ;;  %v3637_v37 = vpack.c.bf16 %v1100_v34, %v1098_v33 }
  0xf5   : > { %3600 = vmatprep.subr.bf16.mxu0 %v3599_v36  ;;  %v1105_v36 = vld [vmem:[#allocation2 + $0x478] sm:$0xff]  ;;  %v1365_v33 = vld [vmem:[#allocation4 + $0xc8] sm:$0xff] }
  0xf6   : > { %v3639_v39 = vpack.c.bf16 %v1105_v36, %v1103_v35  ;;  %v1348_v36 = vld [vmem:[#allocation4 + $0x40] sm:$0xff] }
  0xf7   : > { %925 = vmatmul.mubr.f32.gmra.mrb[2].mxu0 %v818_v42  ;;  %v1107_v42 = vld [vmem:[#allocation2 + $0x488] sm:$0xff] }
  0xf8   : > { %3602 = vmatpush1.bf16.msra.mxu0 %v3601_v41  ;;  %930 = vmatprep.mubr.f32.mxu0 %v4379_v0  ;;  %v1104_v41 = vld [vmem:[#allocation2 + $0x470] sm:$0xff] }
  0xf9   : > { %3604 = vmatprep.subr.bf16.mxu0 %v3603_v43  ;;  %v1109_v43 = vld [vmem:[#allocation2 + $0x498] sm:$0xff]  ;;  %v3641_v44 = vpack.c.bf16 %v1104_v41, %v1102_v40 }
  0xfa   : > { %v3643_v46 = vpack.c.bf16 %v1109_v43, %v1107_v42  ;;  %v1350_v42 = vld [vmem:[#allocation4 + $0x50] sm:$0xff]  ;;  %v1351_v43 = vld [vmem:[#allocation4 + $0x58] sm:$0xff] }
  0xfb   : > { %931 = vmatmul.mubr.f32.gmra.mrb[4].mxu0 %v819_v49  ;;  %v1111_v49 = vld [vmem:[#allocation2 + $0x4a8] sm:$0xff] }
  0xfc   : > { %3606 = vmatpush1.bf16.msra.mxu0 %v3605_v48  ;;  %936 = vmatprep.mubr.f32.mxu0 %v4379_v0  ;;  %v1108_v48 = vld [vmem:[#allocation2 + $0x490] sm:$0xff] }
  0xfd   : > { %3608 = vmatprep.subr.bf16.mxu0 %v3607_v50  ;;  %v1113_v50 = vld [vmem:[#allocation2 + $0x4b8] sm:$0xff]  ;;  %v3645_v51 = vpack.c.bf16 %v1108_v48, %v1106_v47  ;;  %v1352_v48 = vld [vmem:[#allocation4 + $0x60] sm:$0xff] }
  0xfe   : > { %v3647_v52 = vpack.c.bf16 %v1113_v50, %v1111_v49  ;;  %v1353_v49 = vld [vmem:[#allocation4 + $0x68] sm:$0xff]  ;;  %v1370_v50 = vld [vmem:[#allocation4 + $0xf0] sm:$0xff] }
  0xff   : > { %937 = vmatmul.mubr.f32.gmra.mrb[6].mxu0 %v820_v56  ;;  %v1117_v56 = vld [vmem:[#allocation2 + $0x4d8] sm:$0xff] }
 0x100   : > { %3610 = vmatpush1.bf16.msra.mxu0 %v3609_v55  ;;  %1052 = vmatprep.mubr.f32.mxu0 %v4379_v0  ;;  %v1115_v55 = vld [vmem:[#allocation2 + $0x4c8] sm:$0xff] }
 0x101   : > { %3612 = vmatprep.subr.bf16.mxu0 %v3611_v57  ;;  %v3649_v57 = vpack.c.bf16 %v1112_v54, %v1110_v53  ;;  %v3651_v58 = vpack.c.bf16 %v1117_v56, %v1115_v55  ;;  %v1221_v54 = vlaneseq }
 0x103   : > { %v4684_v55 = vshrl.u32 %v1221_v54, 7 }
 0x104   : > { %3614 = vmatpush1.bf16.msra.mxu0 %v3613_v62  ;;  %v1121_v62 = vld [vmem:[#allocation2 + $0x4f8] sm:$0xff] }
 0x105   : > { %3616 = vmatprep.subr.bf16.mxu0 %v3615_v63  ;;  %v3653_v63 = vpack.c.bf16 %v1116_v60, %v1114_v59  ;;  %v3655_v1 = vpack.c.bf16 %v1121_v62, %v1119_v61  ;;  %v4687_v56 = vsub.s32 0, %v4684_v55 }
 0x108   : > { %3618 = vmatpush1.bf16.msra.mxu0 %v3617_v5  ;;  %v1085_v5 = vld [vmem:[%s4642_s23 + $0x4] sm:$0xff] }
 0x109   : > { %3620 = vmatprep.subr.bf16.mxu0 %v3619_v6  ;;  %v1086_v6 = vld [vmem:[%s4642_s23 + $0xc] sm:$0xff] }
 0x10c   : > { %3622 = vmatpush1.bf16.msra.mxu0 %v3621_v11  ;;  %v1340_v11 = vld [vmem:[#allocation4] sm:$0xff] }
 0x10d   : > { %3624 = vmatprep.subr.bf16.mxu0 %v3623_v12  ;;  %v3669_v12 = vpack.c.bf16 %v1357_v10, %v1356_v9  ;;  %v3671_v16 = vpack.c.bf16 %v1341_v13, %v1340_v11 }
 0x10f   : > { %3670 = vmatprep.subr.bf16.mxu1 %v3669_v12 }
 0x110   : > { %3626 = vmatpush1.bf16.msra.mxu0 %v3625_v17  ;;  %v3673_v17 = vpack.c.bf16 %v1359_v15, %v1358_v14  ;;  %3672 = vmatpush3.bf16.msra.mxu1 %v3671_v16 }
 0x111   : > { %3628 = vmatprep.subr.bf16.mxu0 %v3627_v18  ;;  %v1342_v18 = vld [vmem:[#allocation4 + $0x10] sm:$0xff] }
 0x112   : > { %v3675_v22 = vpack.c.bf16 %v1343_v19, %v1342_v18  ;;  %3674 = vmatprep.subr.bf16.mxu1 %v3673_v17 }
 0x113   : > { %1053 = vmatmul.mubr.f32.vlgmr.msra.gmra.mrb[0].mxu0 %v951_v23  ;;  %v3677_v23 = vpack.c.bf16 %v1361_v21, %v1360_v20 }
 0x114   : > { %3630 = vmatpush1.bf16.msra.mxu0 %v3629_v24  ;;  %1058 = vmatprep.mubr.f32.mxu0 %v4379_v0  ;;  %v1344_v24 = vld [vmem:[#allocation4 + $0x20] sm:$0xff] }
 0x115   : > { %3632 = vmatprep.subr.bf16.mxu0 %v3631_v25  ;;  %v1345_v25 = vld [vmem:[#allocation4 + $0x28] sm:$0xff]  ;;  %3676 = vmatpush3.bf16.msra.mxu1 %v3675_v22 }
 0x116   : > { %v3679_v28 = vpack.c.bf16 %v1345_v25, %v1344_v24  ;;  %3678 = vmatprep.subr.bf16.mxu1 %v3677_v23 }
 0x117   : > { %1059 = vmatmul.mubr.f32.gmra.mrb[2].mxu0 %v952_v31  ;;  %v1347_v31 = vld [vmem:[#allocation4 + $0x38] sm:$0xff] }
 0x118   : > { %3634 = vmatpush1.bf16.msra.mxu0 %v3633_v30  ;;  %1064 = vmatprep.mubr.f32.mxu0 %v4379_v0  ;;  %v1346_v30 = vld [vmem:[#allocation4 + $0x30] sm:$0xff] }
 0x119   : > { %3636 = vmatprep.subr.bf16.mxu0 %v3635_v32  ;;  %v1364_v32 = vld [vmem:[#allocation4 + $0xc0] sm:$0xff]  ;;  %3680 = vmatpush3.bf16.msra.mxu1 %v3679_v28  ;;  %v3683_v34 = vpack.c.bf16 %v1347_v31, %v1346_v30  ;;  %v1354_v28 = vld [vmem:[#allocation4 + $0x70] sm:$0xff]  ;;  %v1481_v31 = vld [vmem:[#allocation6 + $0x108] sm:$0xff] }
 0x11a   : > { %3682 = vmatprep.subr.bf16.mxu1 %v3681_v29  ;;  %v3685_v35 = vpack.c.bf16 %v1365_v33, %v1364_v32  ;;  %v1355_v29 = vld [vmem:[#allocation4 + $0x78] sm:$0xff] }
 0x11b   : > { %1065 = vmatmul.mubr.f32.gmra.mrb[4].mxu0 %v953_v38  ;;  %v1366_v38 = vld [vmem:[#allocation4 + $0xd0] sm:$0xff]  ;;  %v3699_v30 = vpack.c.bf16 %v1355_v29, %v1354_v28  ;;  %v1483_v32 = vld [vmem:[#allocation6 + $0x118] sm:$0xff]  ;;  %v1447_v29 = vld [vmem:[#allocation6] sm:$0xff] }
 0x11c   : > { %3638 = vmatpush1.bf16.msra.mxu0 %v3637_v37  ;;  %1070 = vmatprep.mubr.f32.mxu0 %v4379_v0  ;;  %v1349_v37 = vld [vmem:[#allocation4 + $0x48] sm:$0xff]  ;;  %v3701_v33 = vpack.c.bf16 %v1483_v32, %v1481_v31 }
 0x11d   : > { %3640 = vmatprep.subr.bf16.mxu0 %v3639_v39  ;;  %v1367_v39 = vld [vmem:[#allocation4 + $0xd8] sm:$0xff]  ;;  %3684 = vmatpush3.bf16.msra.mxu1 %v3683_v34  ;;  %v3687_v40 = vpack.c.bf16 %v1349_v37, %v1348_v36  ;;  %v1480_v34 = vld [vmem:[#allocation6 + $0x100] sm:$0xff]  ;;  %v1485_v36 = vld [vmem:[#allocation6 + $0x128] sm:$0xff] }
 0x11e   : > { %3686 = vmatprep.subr.bf16.mxu1 %v3685_v35  ;;  %v3689_v41 = vpack.c.bf16 %v1367_v39, %v1366_v38  ;;  %v1482_v35 = vld [vmem:[#allocation6 + $0x110] sm:$0xff]  ;;  %v1487_v37 = vld [vmem:[#allocation6 + $0x138] sm:$0xff] }
 0x11f   : > { %1071 = vmatmul.mubr.f32.gmra.mrb[6].mxu0 %v954_v45  ;;  %v1369_v45 = vld [vmem:[#allocation4 + $0xe8] sm:$0xff]  ;;  %v3703_v39 = vpack.c.bf16 %v1482_v35, %v1480_v34 }
 0x120   : > { %3642 = vmatpush1.bf16.msra.mxu0 %v3641_v44  ;;  %1186 = vmatprep.mubr.f32.mxu0 %v4379_v0  ;;  %v1368_v44 = vld [vmem:[#allocation4 + $0xe0] sm:$0xff]  ;;  %v1452_v35 = vld [vmem:[#allocation6 + $0x28] sm:$0xff] }
 0x121   : > { %3644 = vmatprep.subr.bf16.mxu0 %v3643_v46  ;;  %3688 = vmatpush3.bf16.msra.mxu1 %v3687_v40  ;;  %v3691_v46 = vpack.c.bf16 %v1351_v43, %v1350_v42  ;;  %v3693_v47 = vpack.c.bf16 %v1369_v45, %v1368_v44  ;;  %v1484_v42 = vld [vmem:[#allocation6 + $0x120] sm:$0xff]  ;;  %v1486_v43 = vld [vmem:[#allocation6 + $0x130] sm:$0xff]  ;;  %v1489_v44 = vld [vmem:[#allocation6 + $0x148] sm:$0xff] }
 0x122   : > { %3690 = vmatprep.subr.bf16.mxu1 %v3689_v41  ;;  %v3705_v41 = vpack.c.bf16 %v1487_v37, %v1485_v36  ;;  %v1491_v45 = vld [vmem:[#allocation6 + $0x158] sm:$0xff] }
 0x123   : > { %v1454_v36 = vld [vmem:[#allocation6 + $0x38] sm:$0xff] }
 0x124   : > { %3646 = vmatpush1.bf16.msra.mxu0 %v3645_v51  ;;  %v1371_v51 = vld [vmem:[#allocation4 + $0xf8] sm:$0xff] }
 0x125   : > { %3648 = vmatprep.subr.bf16.mxu0 %v3647_v52  ;;  %3692 = vmatpush3.bf16.msra.mxu1 %v3691_v46  ;;  %v3695_v52 = vpack.c.bf16 %v1353_v49, %v1352_v48  ;;  %v3697_v53 = vpack.c.bf16 %v1371_v51, %v1370_v50  ;;  %v3709_v49 = vpack.c.bf16 %v1491_v45, %v1489_v44  ;;  %v1488_v50 = vld [vmem:[#allocation6 + $0x140] sm:$0xff]  ;;  %v1490_v51 = vld [vmem:[#allocation6 + $0x150] sm:$0xff] }
 0x126   : > { %3694 = vmatprep.subr.bf16.mxu1 %v3693_v47  ;;  %v3707_v47 = vpack.c.bf16 %v1486_v43, %v1484_v42  ;;  %v3711_v54 = vpack.c.bf16 %v1490_v51, %v1488_v50  ;;  %v3737_v45 = vpack.c.bf16 %v1454_v36, %v1452_v35  ;;  %v1458_v50 = vld [vmem:[#allocation6 + $0x58] sm:$0xff]  ;;  %v1677_v35 = vld [vmem:[#allocation6 + $0x210] sm:$0xff]  ;;  %v1680_v36 = vld [vmem:[#allocation6 + $0x228] sm:$0xff] }
 0x128   : > { %3650 = vmatpush1.bf16.msra.mxu0 %v3649_v57  ;;  %v1219_v57 = vld [vmem:[%s5149_s2] sm:$0x3] }
 0x129   : > { %3652 = vmatprep.subr.bf16.mxu0 %v3651_v58  ;;  %3696 = vmatpush3.bf16.msra.mxu1 %v3695_v52  ;;  %v1227_v58 = vsub.s32 1, %v4684_v55  ;;  %v1224_v59 = vrot.slane %v1219_v57, %v4687_v56  ;;  %v1493_v52 = vld [vmem:[#allocation6 + $0x168] sm:$0xff] }
 0x12a   : > { %3698 = vmatprep.subr.bf16.mxu1 %v3697_v53  ;;  %v1495_v53 = vld [vmem:[#allocation6 + $0x178] sm:$0xff] }
 0x12b   : > { %v1228_v60 = vrot.slane %v1219_v57, %v1227_v58  ;;  %v3713_v57 = vpack.c.bf16 %v1495_v53, %v1493_v52 }
 0x12c   : > { %3654 = vmatpush1.bf16.msra.mxu0 %v3653_v63 }
 0x12d   : > { %3656 = vmatprep.subr.bf16.mxu0 %v3655_v1  ;;  %3700 = vmatpush3.bf16.msra.mxu1 %v3699_v30  ;;  %v1449_v30 = vld [vmem:[#allocation6 + $0x10] sm:$0xff] }
 0x12e   : > { %3702 = vmatprep.subr.bf16.mxu1 %v3701_v33  ;;  %v3735_v34 = vpack.c.bf16 %v1449_v30, %v1447_v29  ;;  %v1676_v29 = vld [vmem:[#allocation6 + $0x208] sm:$0xff]  ;;  %v1678_v30 = vld [vmem:[#allocation6 + $0x218] sm:$0xff] }
 0x130   : > { %3658 = vmatpush1.bf16.msra.mxu0 %v3657_v4 }
 0x133   : > { %1187 = vmatmul.mubr.f32.vlgmr.msra.gmra.mrb[0].mxu0 %v1085_v5 }
 0x134   : > { %1192 = vmatprep.mubr.f32.mxu0 %v4379_v0 }
 0x137   : > { %1193 = vmatmul.mubr.f32.gmra.mrb[2].mxu0 %v1086_v6 }
 0x138   : > { %1198 = vmatprep.mubr.f32.mxu0 %v4379_v0 }
 0x13b   : > { %1199 = vmatmul.mubr.f32.gmra.mrb[4].mxu0 %v1087_v7 }
 0x13c   : > { %1204 = vmatprep.mubr.f32.mxu0 %v4379_v0 }
 0x13f   : > { %1205 = vmatmul.mubr.f32.gmra.mrb[6].mxu0 %v1088_v8 }
 0x140   : > { %1327 = vmatprep.mubr.f32.mxu0 %v4379_v0 }
 0x206   : > { %v1188_v61 = vpop.f32.mrb[0].mxu0 }
 0x207   : > { %v1231_v62 = vadd.f32 %v1224_v59, %v1188_v61  ;;  %v1190_v63 = vpop.f32.mrb[1].mxu0  ;;  %v1497_v61 = vld [vmem:[#allocation6 + $0x188] sm:$0xff] }
 0x208   : > { %v1232_v1 = vadd.f32 %v1228_v60, %v1190_v63 }
 0x209   : > { %4182 = vtanh.f32 %v1231_v62  ;;  %v1499_v62 = vld [vmem:[#allocation6 + $0x198] sm:$0xff] }
 0x20a   : > { %v1194_v2 = vpop.f32.mrb[2].mxu0  ;;  %4184 = vtanh.f32 %v1232_v1  ;;  %v3717_v1 = vpack.c.bf16 %v1499_v62, %v1497_v61  ;;  %v1460_v61 = vld [vmem:[#allocation6 + $0x68] sm:$0xff]  ;;  %v1462_v62 = vld [vmem:[#allocation6 + $0x78] sm:$0xff] }
 0x20b   : > { %v1233_v3 = vadd.f32 %v1224_v59, %v1194_v2  ;;  %v1196_v4 = vpop.f32.mrb[3].mxu0  ;;  %v1496_v2 = vld [vmem:[#allocation6 + $0x180] sm:$0xff] }
 0x20c   : > { %v1234_v5 = vadd.f32 %v1228_v60, %v1196_v4  ;;  %v1501_v4 = vld [vmem:[#allocation6 + $0x1a8] sm:$0xff] }
 0x20d   : > { %4186 = vtanh.f32 %v1233_v3  ;;  %v1498_v3 = vld [vmem:[#allocation6 + $0x190] sm:$0xff] }
 0x20e   : > { %4188 = vtanh.f32 %v1234_v5  ;;  %v1200_v6 = vpop.f32.mrb[4].mxu0  ;;  %v1503_v5 = vld [vmem:[#allocation6 + $0x1b8] sm:$0xff] }
 0x20f   : > { %v1235_v7 = vadd.f32 %v1224_v59, %v1200_v6  ;;  %v1202_v8 = vpop.f32.mrb[5].mxu0  ;;  %v3719_v6 = vpack.c.bf16 %v1498_v3, %v1496_v2  ;;  %v1459_v2 = vld [vmem:[#allocation6 + $0x60] sm:$0xff]  ;;  %v1461_v3 = vld [vmem:[#allocation6 + $0x70] sm:$0xff] }
 0x210   : > { %v1236_v9 = vadd.f32 %v1228_v60, %v1202_v8  ;;  %v1500_v8 = vld [vmem:[#allocation6 + $0x1a0] sm:$0xff] }
 0x211   : > { %4190 = vtanh.f32 %v1235_v7  ;;  %v3721_v7 = vpack.c.bf16 %v1503_v5, %v1501_v4  ;;  %v1464_v4 = vld [vmem:[#allocation6 + $0x88] sm:$0xff]  ;;  %v1466_v5 = vld [vmem:[#allocation6 + $0x98] sm:$0xff] }
 0x212   : > { %v1206_v10 = vpop.f32.mrb[6].mxu0  ;;  %4192 = vtanh.f32 %v1236_v9  ;;  %v1502_v9 = vld [vmem:[#allocation6 + $0x1b0] sm:$0xff] }
 0x213   : > { %v1237_v11 = vadd.f32 %v1224_v59, %v1206_v10  ;;  %v1208_v12 = vpop.f32.mrb[7].mxu0  ;;  %v4183_v14 = vpop.eup %4182  ;;  %v1492_v59 = vld [vmem:[#allocation6 + $0x160] sm:$0xff]  ;;  %v3723_v10 = vpack.c.bf16 %v1502_v9, %v1500_v8  ;;  %v1465_v9 = vld [vmem:[#allocation6 + $0x90] sm:$0xff] }
 0x214   : > { %v1238_v13 = vadd.f32 %v1228_v60, %v1208_v12  ;;  %v4185_v15 = vpop.eup %4184  ;;  %v1494_v60 = vld [vmem:[#allocation6 + $0x170] sm:$0xff]  ;;  %v1507_v12 = vld [vmem:[#allocation6 + $0x1d8] sm:$0xff]  ;;  %v1463_v8 = vld [vmem:[#allocation6 + $0x80] sm:$0xff] }
 0x215   : > { %4194 = vtanh.f32 %v1237_v11  ;;  %v3715_v63 = vpack.c.bf16 %v1494_v60, %v1492_v59  ;;  %v1505_v11 = vld [vmem:[#allocation6 + $0x1c8] sm:$0xff]  ;;  %v1455_v59 = vld [vmem:[#allocation6 + $0x40] sm:$0xff]  ;;  %v1457_v60 = vld [vmem:[#allocation6 + $0x50] sm:$0xff] }
 0x216   : > { %4196 = vtanh.f32 %v1238_v13  ;;  %v3725_v13 = vpack.c.bf16 %v1507_v12, %v1505_v11  ;;  %v1470_v11 = vld [vmem:[#allocation6 + $0xb8] sm:$0xff]  ;;  %v3751_v12 = vpack.c.bf16 %v1465_v9, %v1463_v8  ;;  %v1695_v9 = vld [vmem:[#allocation6 + $0x2a0] sm:$0xff] }
 0x217   : > { %v4187_v16 = vpop.eup %4186 }
 0x218   : > { %v4189_v17 = vpop.eup %4188  ;;  %v3661_v18 = vpack.c.bf16 %v4187_v16, %v4183_v14  ;;  %v1504_v14 = vld [vmem:[#allocation6 + $0x1c0] sm:$0xff] }
 0x219   : > { %v3659_v19 = vpack.c.bf16 %v4189_v17, %v4185_v15  ;;  %v1506_v15 = vld [vmem:[#allocation6 + $0x1d0] sm:$0xff]  ;;  %v1509_v17 = vld [vmem:[#allocation6 + $0x1e8] sm:$0xff] }
 0x21a   : > { %v3727_v16 = vpack.c.bf16 %v1506_v15, %v1504_v14  ;;  %v1467_v14 = vld [vmem:[#allocation6 + $0xa0] sm:$0xff]  ;;  %v1469_v15 = vld [vmem:[#allocation6 + $0xb0] sm:$0xff] }
 0x21b   : > { %3660 = vmatprep.subr.bf16.mxu0 %v3659_v19  ;;  %v4191_v20 = vpop.eup %4190 }
 0x21c   : > { %3662 = vmatpush1.bf16.msra.mxu0 %v3661_v18  ;;  %v4193_v21 = vpop.eup %4192  ;;  %v1511_v18 = vld [vmem:[#allocation6 + $0x1f8] sm:$0xff] }
 0x21d   : > { %v3729_v19 = vpack.c.bf16 %v1511_v18, %v1509_v17  ;;  %v1474_v17 = vld [vmem:[#allocation6 + $0xd8] sm:$0xff]  ;;  %v3755_v18 = vpack.c.bf16 %v1469_v15, %v1467_v14  ;;  %v1699_v15 = vld [vmem:[#allocation6 + $0x2c0] sm:$0xff] }
 0x21f   : > { %v4195_v22 = vpop.eup %4194 }
 0x220   : > { %v4197_v23 = vpop.eup %4196  ;;  %v3666_v24 = vpack.c.bf16 %v4195_v22, %v4191_v20  ;;  %v1508_v20 = vld [vmem:[#allocation6 + $0x1e0] sm:$0xff] }
 0x221   : > { %v3663_v25 = vpack.c.bf16 %v4197_v23, %v4193_v21  ;;  %v1510_v21 = vld [vmem:[#allocation6 + $0x1f0] sm:$0xff]  ;;  %v1448_v23 = vld [vmem:[#allocation6 + $0x8] sm:$0xff] }
 0x222   : > { %v3731_v22 = vpack.c.bf16 %v1510_v21, %v1508_v20  ;;  %v1471_v20 = vld [vmem:[#allocation6 + $0xc0] sm:$0xff]  ;;  %v1473_v21 = vld [vmem:[#allocation6 + $0xd0] sm:$0xff] }
 0x223   : > { %3665 = vmatprep.subr.msk.bf16.mxu0 %vm3664_vm2, %v3663_v25 }
 0x224   : > { %3668 = vmatpush1.bf16.msk.msra.mxu0 %vm3664_vm2, %v3666_v24  ;;  %v1450_v24 = vld [vmem:[#allocation6 + $0x18] sm:$0xff] }
 0x225   : > { %v3733_v25 = vpack.c.bf16 %v1450_v24, %v1448_v23  ;;  %v1478_v23 = vld [vmem:[#allocation6 + $0xf8] sm:$0xff]  ;;  %v3759_v24 = vpack.c.bf16 %v1473_v21, %v1471_v20  ;;  %v1703_v21 = vld [vmem:[#allocation6 + $0x2e0] sm:$0xff] }
 0x227   : > { %2990 = vmatmul.mubr.msk.f32.vlgmr.msra.gmra.mrb[8].mxu0 %vm1249_vm3, %v1247_v26 }
 0x228   : > { %1333 = vmatprep.mubr.f32.mxu0 %v4379_v0 }
 0x22b   : > { %2991 = vmatmul.mubr.msk.f32.gmra.mrb[10].mxu0 %vm1249_vm3, %v1248_v27 }
 0x22c   : > { %2129 = vmatprep.mubr.f32.mxu0 %v4379_v0 }
 0x2fa   : > { %v1329_v38 = vpop.f32.mrb[8].mxu0 }
 0x2fb   : > { %v1331_v40 = vpop.f32.mrb[9].mxu0 }
 0x2fc   : > { %1436 = vmatprep.mubr.f32.mxu1 %v1331_v40 }
 0x2fd   : > { %1437 = vmatmul.mubr.f32.vlgmr.msra.gmra.mrb[0].mxu1 %v1329_v38 }
 0x2fe   : > { %v1335_v46 = vpop.f32.mrb[10].mxu0  ;;  %3704 = vmatpush1.bf16.msra.mxu1 %v3703_v39 }
 0x2ff   : > { %v1337_v48 = vpop.f32.mrb[11].mxu0  ;;  %3706 = vmatprep.subr.bf16.mxu1 %v3705_v41 }
 0x300   : > { %1441 = vmatprep.mubr.f32.mxu1 %v1337_v48 }
 0x301   : > { %1442 = vmatmul.mubr.f32.gmra.mrb[2].mxu1 %v1335_v46  ;;  %v1451_v46 = vld [vmem:[#allocation6 + $0x20] sm:$0xff] }
 0x302   : > { %3708 = vmatpush1.bf16.msra.mxu1 %v3707_v47  ;;  %1584 = vmatprep.mubr.f32.mxu1 %v4379_v0  ;;  %v1453_v47 = vld [vmem:[#allocation6 + $0x30] sm:$0xff] }
 0x303   : > { %3710 = vmatprep.subr.bf16.mxu1 %v3709_v49  ;;  %v1456_v49 = vld [vmem:[#allocation6 + $0x48] sm:$0xff] }
 0x306   : > { %3712 = vmatpush1.bf16.msra.mxu1 %v3711_v54  ;;  %v3739_v54 = vpack.c.bf16 %v1453_v47, %v1451_v46  ;;  %v1686_v46 = vld [vmem:[#allocation6 + $0x258] sm:$0xff] }
 0x307   : > { %3714 = vmatprep.subr.bf16.mxu1 %v3713_v57  ;;  %v3741_v57 = vpack.c.bf16 %v1458_v50, %v1456_v49  ;;  %v1683_v49 = vld [vmem:[#allocation6 + $0x240] sm:$0xff]  ;;  %v1685_v50 = vld [vmem:[#allocation6 + $0x250] sm:$0xff] }
 0x30a   : > { %3716 = vmatpush1.bf16.msra.mxu1 %v3715_v63  ;;  %v3743_v63 = vpack.c.bf16 %v1457_v60, %v1455_v59  ;;  %v3775_v59 = vpack.c.bf16 %v1685_v50, %v1683_v49  ;;  %v1809_v50 = vld [vmem:[#allocation6 + $0x370] sm:$0xff] }
 0x30b   : > { %3718 = vmatprep.subr.bf16.mxu1 %v3717_v1  ;;  %v3745_v1 = vpack.c.bf16 %v1462_v62, %v1460_v61  ;;  %v1687_v61 = vld [vmem:[#allocation6 + $0x260] sm:$0xff]  ;;  %v1692_v62 = vld [vmem:[#allocation6 + $0x288] sm:$0xff] }
 0x30e   : > { %3720 = vmatpush1.bf16.msra.mxu1 %v3719_v6  ;;  %v3747_v6 = vpack.c.bf16 %v1461_v3, %v1459_v2  ;;  %v1691_v3 = vld [vmem:[#allocation6 + $0x280] sm:$0xff] }
 0x30f   : > { %3722 = vmatprep.subr.bf16.mxu1 %v3721_v7  ;;  %v3749_v7 = vpack.c.bf16 %v1466_v5, %v1464_v4  ;;  %v1693_v4 = vld [vmem:[#allocation6 + $0x290] sm:$0xff]  ;;  %v1696_v5 = vld [vmem:[#allocation6 + $0x2a8] sm:$0xff] }
 0x312   : > { %3724 = vmatpush1.bf16.msra.mxu1 %v3723_v10  ;;  %v1468_v10 = vld [vmem:[#allocation6 + $0xa8] sm:$0xff] }
 0x313   : > { %3726 = vmatprep.subr.bf16.mxu1 %v3725_v13  ;;  %v3753_v13 = vpack.c.bf16 %v1470_v11, %v1468_v10  ;;  %v1697_v10 = vld [vmem:[#allocation6 + $0x2b0] sm:$0xff]  ;;  %v1700_v11 = vld [vmem:[#allocation6 + $0x2c8] sm:$0xff] }
 0x316   : > { %3728 = vmatpush1.bf16.msra.mxu1 %v3727_v16  ;;  %v1472_v16 = vld [vmem:[#allocation6 + $0xc8] sm:$0xff] }
 0x317   : > { %3730 = vmatprep.subr.bf16.mxu1 %v3729_v19  ;;  %v3757_v19 = vpack.c.bf16 %v1474_v17, %v1472_v16  ;;  %v1701_v16 = vld [vmem:[#allocation6 + $0x2d0] sm:$0xff]  ;;  %v1704_v17 = vld [vmem:[#allocation6 + $0x2e8] sm:$0xff] }
 0x31a   : > { %3732 = vmatpush1.bf16.msra.mxu1 %v3731_v22  ;;  %v1476_v22 = vld [vmem:[#allocation6 + $0xe8] sm:$0xff] }
 0x31b   : > { %3734 = vmatprep.subr.bf16.mxu1 %v3733_v25  ;;  %v3761_v25 = vpack.c.bf16 %v1478_v23, %v1476_v22  ;;  %v1705_v22 = vld [vmem:[#allocation6 + $0x2f0] sm:$0xff]  ;;  %v1796_v23 = vld [vmem:[#allocation6 + $0x308] sm:$0xff] }
 0x3d0   : > { %v3094_v26 = vpop.f32.mrb[0].mxu1 }
 0x3d1   : > { %v3095_v27 = vpop.f32.mrb[1].mxu1 }
 0x3d2   : > { %v4707_v28 = vadd.f32 %v3095_v27, %v3094_v26  ;;  %v1475_v26 = vld [vmem:[#allocation6 + $0xe0] sm:$0xff]  ;;  %v1477_v27 = vld [vmem:[#allocation6 + $0xf0] sm:$0xff] }
 0x3d4   : > { %v3097_v31 = vpop.f32.mrb[2].mxu1  ;;  %v1515_v37 = vrot.slane %v4707_v28, 1  ;;  %v1708_v38 = vrot.slane %v4707_v28, 2  ;;  %v1828_v39 = vrot.slane %v4707_v28, 3  ;;  %v1947_v40 = vrot.slane %v4707_v28, 4 }
 0x3d5   : > { %v3098_v32 = vpop.f32.mrb[3].mxu1 }
 0x3d6   : > { %v4709_v33 = vadd.f32 %v3098_v32, %v3097_v31  ;;  %v3763_v31 = vpack.c.bf16 %v1477_v27, %v1475_v26  ;;  %v3765_v32 = vpack.c.bf16 %v1678_v30, %v1676_v29  ;;  %v1795_v27 = vld [vmem:[#allocation6 + $0x300] sm:$0xff]  ;;  %v1797_v29 = vld [vmem:[#allocation6 + $0x310] sm:$0xff]  ;;  %v1800_v30 = vld [vmem:[#allocation6 + $0x328] sm:$0xff] }
 0x3d8   : > { %v1516_v41 = vrot.slane %v4709_v33, 1  ;;  %v1709_v42 = vrot.slane %v4709_v33, 2  ;;  %v1829_v43 = vrot.slane %v4709_v33, 3  ;;  %v1948_v44 = vrot.slane %v4709_v33, 4 }
 0x3da   : > { %v1517_v48 = vsel %vm1514_vm4, %v1515_v37, %v1516_v41  ;;  %v4723_v51 = vsel %vm1707_vm5, %v1708_v38, %v1709_v42  ;;  %v4728_v52 = vsel %vm1827_vm6, %v1828_v39, %v1829_v43  ;;  %v4733_v53 = vsel %vm1256_vm0, %v1947_v40, %v1948_v44  ;;  %v1682_v37 = vld [vmem:[#allocation6 + $0x238] sm:$0xff]  ;;  %v1679_v40 = vld [vmem:[#allocation6 + $0x220] sm:$0xff] }
 0x3db   : > { %1585 = vmatmul.mubr.f32.vlgmr.msra.gmra.mrb[4].mxu1 %v1517_v48  ;;  %v3769_v39 = vpack.c.bf16 %v1682_v37, %v1680_v36  ;;  %v1801_v36 = vld [vmem:[#allocation6 + $0x330] sm:$0xff]  ;;  %v1804_v37 = vld [vmem:[#allocation6 + $0x348] sm:$0xff] }
 0x3dc   : > { %3736 = vmatpush1.bf16.msra.mxu1 %v3735_v34  ;;  %1590 = vmatprep.mubr.f32.mxu1 %v4379_v0  ;;  %v1675_v34 = vld [vmem:[#allocation6 + $0x200] sm:$0xff] }
 0x3dd   : > { %3738 = vmatprep.subr.bf16.mxu1 %v3737_v45  ;;  %v3767_v38 = vpack.c.bf16 %v1677_v35, %v1675_v34  ;;  %v1684_v45 = vld [vmem:[#allocation6 + $0x248] sm:$0xff]  ;;  %v1799_v35 = vld [vmem:[#allocation6 + $0x320] sm:$0xff] }
 0x3de   : > { %v3773_v48 = vpack.c.bf16 %v1686_v46, %v1684_v45  ;;  %v1805_v45 = vld [vmem:[#allocation6 + $0x350] sm:$0xff]  ;;  %v1808_v46 = vld [vmem:[#allocation6 + $0x368] sm:$0xff] }
 0x3df   : > { %1591 = vmatmul.mubr.f32.gmra.mrb[6].mxu1 %v1516_v41  ;;  %v1681_v41 = vld [vmem:[#allocation6 + $0x230] sm:$0xff] }
 0x3e0   : > { %3740 = vmatpush1.bf16.msra.mxu1 %v3739_v54  ;;  %1661 = vmatprep.mubr.f32.mxu1 %v4379_v0  ;;  %v3771_v47 = vpack.c.bf16 %v1681_v41, %v1679_v40  ;;  %v1688_v54 = vld [vmem:[#allocation6 + $0x268] sm:$0xff]  ;;  %v1803_v41 = vld [vmem:[#allocation6 + $0x340] sm:$0xff] }
 0x3e1   : > { %3742 = vmatprep.subr.bf16.mxu1 %v3741_v57  ;;  %v1690_v57 = vld [vmem:[#allocation6 + $0x278] sm:$0xff] }
 0x3e2   : > { %v3777_v60 = vpack.c.bf16 %v1690_v57, %v1688_v54  ;;  %v1812_v54 = vld [vmem:[#allocation6 + $0x388] sm:$0xff]  ;;  %v1814_v57 = vld [vmem:[#allocation6 + $0x398] sm:$0xff] }
 0x3e4   : > { %3744 = vmatpush1.bf16.msra.mxu1 %v3743_v63  ;;  %v1694_v63 = vld [vmem:[#allocation6 + $0x298] sm:$0xff] }
 0x3e5   : > { %3746 = vmatprep.subr.bf16.mxu1 %v3745_v1  ;;  %v3781_v2 = vpack.c.bf16 %v1694_v63, %v1692_v62  ;;  %v1816_v62 = vld [vmem:[#allocation6 + $0x3a8] sm:$0xff]  ;;  %v1818_v63 = vld [vmem:[#allocation6 + $0x3b8] sm:$0xff] }
 0x3e8   : > { %3748 = vmatpush1.bf16.msra.mxu1 %v3747_v6  ;;  %v1698_v6 = vld [vmem:[#allocation6 + $0x2b8] sm:$0xff] }
 0x3e9   : > { %3750 = vmatprep.subr.bf16.mxu1 %v3749_v7  ;;  %v3783_v7 = vpack.c.bf16 %v1693_v4, %v1691_v3  ;;  %v3785_v8 = vpack.c.bf16 %v1698_v6, %v1696_v5  ;;  %v1817_v3 = vld [vmem:[#allocation6 + $0x3b0] sm:$0xff]  ;;  %v1820_v4 = vld [vmem:[#allocation6 + $0x3c8] sm:$0xff]  ;;  %v1822_v5 = vld [vmem:[#allocation6 + $0x3d8] sm:$0xff] }
 0x3ec   : > { %3752 = vmatpush1.bf16.msra.mxu1 %v3751_v12  ;;  %v1702_v12 = vld [vmem:[#allocation6 + $0x2d8] sm:$0xff] }
 0x3ed   : > { %3754 = vmatprep.subr.bf16.mxu1 %v3753_v13  ;;  %v3787_v13 = vpack.c.bf16 %v1697_v10, %v1695_v9  ;;  %v3789_v14 = vpack.c.bf16 %v1702_v12, %v1700_v11  ;;  %v1821_v9 = vld [vmem:[#allocation6 + $0x3d0] sm:$0xff]  ;;  %v1824_v10 = vld [vmem:[#allocation6 + $0x3e8] sm:$0xff]  ;;  %v1826_v11 = vld [vmem:[#allocation6 + $0x3f8] sm:$0xff] }
 0x3f0   : > { %3756 = vmatpush1.bf16.msra.mxu1 %v3755_v18  ;;  %v1706_v18 = vld [vmem:[#allocation6 + $0x2f8] sm:$0xff] }
 0x3f1   : > { %3758 = vmatprep.subr.bf16.mxu1 %v3757_v19  ;;  %v3791_v19 = vpack.c.bf16 %v1701_v16, %v1699_v15  ;;  %v3793_v20 = vpack.c.bf16 %v1706_v18, %v1704_v17  ;;  %v1825_v15 = vld [vmem:[#allocation6 + $0x3f0] sm:$0xff]  ;;  %v1916_v16 = vld [vmem:[#allocation6 + $0x408] sm:$0xff]  ;;  %v1918_v17 = vld [vmem:[#allocation6 + $0x418] sm:$0xff] }
 0x3f4   : > { %3760 = vmatpush1.bf16.msra.mxu1 %v3759_v24  ;;  %v1798_v24 = vld [vmem:[#allocation6 + $0x318] sm:$0xff] }
 0x3f5   : > { %3762 = vmatprep.subr.bf16.mxu1 %v3761_v25  ;;  %v3795_v25 = vpack.c.bf16 %v1705_v22, %v1703_v21  ;;  %v3797_v26 = vpack.c.bf16 %v1798_v24, %v1796_v23  ;;  %v1917_v21 = vld [vmem:[#allocation6 + $0x410] sm:$0xff]  ;;  %v1920_v22 = vld [vmem:[#allocation6 + $0x428] sm:$0xff]  ;;  %v1922_v23 = vld [vmem:[#allocation6 + $0x438] sm:$0xff] }
 0x3f8   : > { %3764 = vmatpush1.bf16.msra.mxu1 %v3763_v31  ;;  %v1802_v31 = vld [vmem:[#allocation6 + $0x338] sm:$0xff] }
 0x3f9   : > { %3766 = vmatprep.subr.bf16.mxu1 %v3765_v32  ;;  %v3799_v32 = vpack.c.bf16 %v1797_v29, %v1795_v27  ;;  %v3801_v34 = vpack.c.bf16 %v1802_v31, %v1800_v30  ;;  %v1921_v27 = vld [vmem:[#allocation6 + $0x430] sm:$0xff]  ;;  %v1924_v29 = vld [vmem:[#allocation6 + $0x448] sm:$0xff]  ;;  %v1926_v30 = vld [vmem:[#allocation6 + $0x458] sm:$0xff] }
 0x3fb   : > { %1662 = vmatmul.mubr.f32.vlgmr.msra.gmra.mrb[4].mxu1 %v4707_v28  ;;  %v1689_v28 = vld [vmem:[#allocation6 + $0x270] sm:$0xff] }
 0x3fc   : > { %3768 = vmatpush1.bf16.msra.mxu1 %v3767_v38  ;;  %1667 = vmatprep.mubr.f32.mxu1 %v4379_v0  ;;  %v3779_v1 = vpack.c.bf16 %v1689_v28, %v1687_v61  ;;  %v1806_v38 = vld [vmem:[#allocation6 + $0x358] sm:$0xff]  ;;  %v1811_v61 = vld [vmem:[#allocation6 + $0x380] sm:$0xff]  ;;  %v1813_v28 = vld [vmem:[#allocation6 + $0x390] sm:$0xff] }
 0x3fd   : > { %3770 = vmatprep.subr.bf16.mxu1 %v3769_v39  ;;  %v3803_v39 = vpack.c.bf16 %v1801_v36, %v1799_v35  ;;  %v3805_v40 = vpack.c.bf16 %v1806_v38, %v1804_v37  ;;  %v1925_v35 = vld [vmem:[#allocation6 + $0x450] sm:$0xff]  ;;  %v1928_v36 = vld [vmem:[#allocation6 + $0x468] sm:$0xff]  ;;  %v1930_v37 = vld [vmem:[#allocation6 + $0x478] sm:$0xff] }
 0x3ff   : > { %1668 = vmatmul.mubr.f32.gmra.mrb[6].mxu1 %v4709_v33 }
 0x400   : > { %3772 = vmatpush1.bf16.msra.mxu1 %v3771_v47  ;;  %1777 = vmatprep.mubr.f32.mxu1 %v4379_v0  ;;  %v1810_v47 = vld [vmem:[#allocation6 + $0x378] sm:$0xff] }
 0x401   : > { %3774 = vmatprep.subr.bf16.mxu1 %v3773_v48  ;;  %v3807_v48 = vpack.c.bf16 %v1805_v45, %v1803_v41  ;;  %v3809_v49 = vpack.c.bf16 %v1810_v47, %v1808_v46  ;;  %v1932_v41 = vld [vmem:[#allocation6 + $0x488] sm:$0xff]  ;;  %v1934_v45 = vld [vmem:[#allocation6 + $0x498] sm:$0xff] }
 0x402   : > { %v3845_v47 = vpack.c.bf16 %v1934_v45, %v1932_v41 }
 0x404   : > { %3776 = vmatpush1.bf16.msra.mxu1 %v3775_v59 }
 0x405   : > { %3778 = vmatprep.subr.bf16.mxu1 %v3777_v60  ;;  %v3813_v60 = vpack.c.bf16 %v1814_v57, %v1812_v54  ;;  %v1935_v57 = vld [vmem:[#allocation6 + $0x4a0] sm:$0xff] }
 0x408   : > { %3780 = vmatpush1.bf16.msra.mxu1 %v3779_v1  ;;  %v3817_v1 = vpack.c.bf16 %v1818_v63, %v1816_v62  ;;  %v1939_v63 = vld [vmem:[#allocation6 + $0x4c0] sm:$0xff] }
 0x409   : > { %3782 = vmatprep.subr.bf16.mxu1 %v3781_v2  ;;  %v1815_v2 = vld [vmem:[#allocation6 + $0x3a0] sm:$0xff] }
 0x40a   : > { %v3819_v6 = vpack.c.bf16 %v1817_v3, %v1815_v2  ;;  %v1946_v2 = vld [vmem:[#allocation6 + $0x4f8] sm:$0xff] }
 0x40c   : > { %3784 = vmatpush1.bf16.msra.mxu1 %v3783_v7  ;;  %v3821_v7 = vpack.c.bf16 %v1822_v5, %v1820_v4  ;;  %v1943_v5 = vld [vmem:[#allocation6 + $0x4e0] sm:$0xff] }
 0x40d   : > { %3786 = vmatprep.subr.bf16.mxu1 %v3785_v8  ;;  %v1819_v8 = vld [vmem:[#allocation6 + $0x3c0] sm:$0xff] }
 0x40e   : > { %v3823_v12 = vpack.c.bf16 %v1821_v9, %v1819_v8  ;;  %v2033_v8 = vld [vmem:[%s5153_s6] sm:$0x3] }
 0x40f   : > { %v2038_v9 = vrot.slane %v2033_v8, %v4687_v56 }
 0x410   : > { %3788 = vmatpush1.bf16.msra.mxu1 %v3787_v13  ;;  %v3825_v13 = vpack.c.bf16 %v1826_v11, %v1824_v10  ;;  %v2042_v10 = vrot.slane %v2033_v8, %v1227_v58 }
 0x411   : > { %3790 = vmatprep.subr.bf16.mxu1 %v3789_v14  ;;  %v1823_v14 = vld [vmem:[#allocation6 + $0x3e0] sm:$0xff] }
 0x412   : > { %v3827_v18 = vpack.c.bf16 %v1825_v15, %v1823_v14 }
 0x414   : > { %3792 = vmatpush1.bf16.msra.mxu1 %v3791_v19  ;;  %v3829_v19 = vpack.c.bf16 %v1918_v17, %v1916_v16 }
 0x415   : > { %3794 = vmatprep.subr.bf16.mxu1 %v3793_v20  ;;  %v1915_v20 = vld [vmem:[#allocation6 + $0x400] sm:$0xff] }
 0x416   : > { %v3831_v24 = vpack.c.bf16 %v1917_v21, %v1915_v20 }
 0x418   : > { %3796 = vmatpush1.bf16.msra.mxu1 %v3795_v25  ;;  %v3833_v25 = vpack.c.bf16 %v1922_v23, %v1920_v22  ;;  %v2136_v23 = vld [vmem:[#allocation7] sm:$0xff] }
 0x419   : > { %3798 = vmatprep.subr.bf16.mxu1 %v3797_v26  ;;  %v1919_v26 = vld [vmem:[#allocation6 + $0x420] sm:$0xff] }
 0x41a   : > { %v3835_v31 = vpack.c.bf16 %v1921_v27, %v1919_v26  ;;  %v2155_v26 = vld [vmem:[#allocation7 + $0x98] sm:$0xff]  ;;  %v2053_v27 = vld [vmem:[%s5154_s7] sm:$0x1f] }
 0x41b   : > { %1778 = vmatmul.mubr.f32.vlgmr.msra.gmra.mrb[4].mxu1 %v4723_v51  ;;  %v1807_v51 = vld [vmem:[#allocation6 + $0x360] sm:$0xff] }
 0x41c   : > { %3800 = vmatpush1.bf16.msra.mxu1 %v3799_v32  ;;  %1783 = vmatprep.mubr.f32.mxu1 %v4379_v0  ;;  %v3811_v59 = vpack.c.bf16 %v1809_v50, %v1807_v51  ;;  %v3837_v32 = vpack.c.bf16 %v1926_v30, %v1924_v29  ;;  %v1936_v51 = vld [vmem:[#allocation6 + $0x4a8] sm:$0xff]  ;;  %v1938_v50 = vld [vmem:[#allocation6 + $0x4b8] sm:$0xff] }
 0x41d   : > { %3802 = vmatprep.subr.bf16.mxu1 %v3801_v34  ;;  %v1923_v34 = vld [vmem:[#allocation6 + $0x440] sm:$0xff]  ;;  %v3849_v54 = vpack.c.bf16 %v1938_v50, %v1936_v51 }
 0x41e   : > { %v3839_v38 = vpack.c.bf16 %v1925_v35, %v1923_v34  ;;  %v2156_v34 = vld [vmem:[#allocation7 + $0xa0] sm:$0xff]  ;;  %v2157_v35 = vld [vmem:[#allocation7 + $0xa8] sm:$0xff] }
 0x41f   : > { %1784 = vmatmul.mubr.f32.gmra.mrb[6].mxu1 %v1709_v42  ;;  %v3815_v42 = vpack.c.bf16 %v1813_v28, %v1811_v61  ;;  %v1942_v61 = vld [vmem:[#allocation6 + $0x4d8] sm:$0xff] }
 0x420   : > { %3804 = vmatpush1.bf16.msra.mxu1 %v3803_v39  ;;  %1897 = vmatprep.mubr.f32.mxu1 %v4379_v0  ;;  %v3841_v39 = vpack.c.bf16 %v1930_v37, %v1928_v36  ;;  %v3875_v37 = vpack.c.bf16 %v2157_v35, %v2156_v34 }
 0x421   : > { %3806 = vmatprep.subr.bf16.mxu1 %v3805_v40  ;;  %v1929_v40 = vld [vmem:[#allocation6 + $0x470] sm:$0xff] }
 0x424   : > { %3808 = vmatpush1.bf16.msra.mxu1 %v3807_v48  ;;  %v1931_v48 = vld [vmem:[#allocation6 + $0x480] sm:$0xff] }
 0x425   : > { %3810 = vmatprep.subr.bf16.mxu1 %v3809_v49  ;;  %v1933_v49 = vld [vmem:[#allocation6 + $0x490] sm:$0xff] }
 0x428   : > { %3812 = vmatpush1.bf16.msra.mxu1 %v3811_v59  ;;  %v1937_v59 = vld [vmem:[#allocation6 + $0x4b0] sm:$0xff] }
 0x429   : > { %3814 = vmatprep.subr.bf16.mxu1 %v3813_v60  ;;  %v1940_v60 = vld [vmem:[#allocation6 + $0x4c8] sm:$0xff]  ;;  %v3851_v28 = vpack.c.bf16 %v1937_v59, %v1935_v57  ;;  %v2162_v57 = vld [vmem:[#allocation7 + $0xd0] sm:$0xff]  ;;  %v2163_v59 = vld [vmem:[#allocation7 + $0xd8] sm:$0xff] }
 0x42a   : > { %v3853_v62 = vpack.c.bf16 %v1942_v61, %v1940_v60  ;;  %v3887_v61 = vpack.c.bf16 %v2163_v59, %v2162_v57  ;;  %v2251_v57 = vld [vmem:[%s5156_s9 + $0x68] sm:$0xff] }
 0x42c   : > { %3816 = vmatpush1.bf16.msra.mxu1 %v3815_v42  ;;  %v1941_v42 = vld [vmem:[#allocation6 + $0x4d0] sm:$0xff] }
 0x42d   : > { %3818 = vmatprep.subr.bf16.mxu1 %v3817_v1  ;;  %v1944_v1 = vld [vmem:[#allocation6 + $0x4e8] sm:$0xff]  ;;  %v3855_v3 = vpack.c.bf16 %v1941_v42, %v1939_v63  ;;  %v2164_v63 = vld [vmem:[#allocation7 + $0xe0] sm:$0xff] }
 0x42e   : > { %v3857_v4 = vpack.c.bf16 %v1946_v2, %v1944_v1  ;;  %v2165_v42 = vld [vmem:[#allocation7 + $0xe8] sm:$0xff] }
 0x42f   : > { %v3891_v2 = vpack.c.bf16 %v2165_v42, %v2164_v63  ;;  %v3010_v63 = vld [vmem:[%s5156_s9 + $0xf8] sm:$0xff] }
 0x430   : > { %3820 = vmatpush1.bf16.msra.mxu1 %v3819_v6  ;;  %v1945_v6 = vld [vmem:[#allocation6 + $0x4f0] sm:$0xff] }
 0x431   : > { %3822 = vmatprep.subr.bf16.mxu1 %v3821_v7  ;;  %v3859_v7 = vpack.c.bf16 %v1945_v6, %v1943_v5  ;;  %v2166_v5 = vld [vmem:[#allocation7 + $0xf0] sm:$0xff]  ;;  %v2167_v6 = vld [vmem:[#allocation7 + $0xf8] sm:$0xff] }
 0x432   : > { %v3895_v8 = vpack.c.bf16 %v2167_v6, %v2166_v5  ;;  %v3012_v5 = vld [vmem:[%s5156_s9 + $0x108] sm:$0xff] }
 0x434   : > { %3824 = vmatpush1.bf16.msra.mxu1 %v3823_v12 }
 0x435   : > { %3826 = vmatprep.subr.bf16.mxu1 %v3825_v13 }
 0x438   : > { %3828 = vmatpush1.bf16.msra.mxu1 %v3827_v18  ;;  %v2152_v18 = vld [vmem:[#allocation7 + $0x80] sm:$0xff] }
 0x439   : > { %3830 = vmatprep.subr.bf16.mxu1 %v3829_v19  ;;  %v2153_v19 = vld [vmem:[#allocation7 + $0x88] sm:$0xff] }
 0x43a   : > { %v3867_v22 = vpack.c.bf16 %v2153_v19, %v2152_v18  ;;  %v3001_v19 = vld [vmem:[%s5156_s9 + $0xb0] sm:$0xff] }
 0x43b   : > { %1898 = vmatmul.mubr.f32.vlgmr.msra.gmra.mrb[4].mxu1 %v4728_v52  ;;  %v1927_v52 = vld [vmem:[#allocation6 + $0x460] sm:$0xff] }
 0x43c   : > { %3832 = vmatpush1.bf16.msra.mxu1 %v3831_v24  ;;  %1903 = vmatprep.mubr.f32.mxu1 %v4379_v0  ;;  %v3843_v46 = vpack.c.bf16 %v1929_v40, %v1927_v52  ;;  %v2137_v24 = vld [vmem:[#allocation7 + $0x8] sm:$0xff]  ;;  %v2158_v52 = vld [vmem:[#allocation7 + $0xb0] sm:$0xff]  ;;  %v2159_v40 = vld [vmem:[#allocation7 + $0xb8] sm:$0xff] }
 0x43d   : > { %3834 = vmatprep.subr.bf16.mxu1 %v3833_v25  ;;  %v2154_v25 = vld [vmem:[#allocation7 + $0x90] sm:$0xff]  ;;  %v3869_v29 = vpack.c.bf16 %v2137_v24, %v2136_v23  ;;  %v3879_v45 = vpack.c.bf16 %v2159_v40, %v2158_v52  ;;  %v3006_v24 = vld [vmem:[%s5156_s9 + $0xd8] sm:$0xff]  ;;  %v2243_v52 = vld [vmem:[%s5156_s9 + $0x28] sm:$0xff] }
 0x43e   : > { %v3871_v30 = vpack.c.bf16 %v2155_v26, %v2154_v25  ;;  %v3005_v23 = vld [vmem:[%s5156_s9 + $0xd0] sm:$0xff]  ;;  %v3007_v26 = vld [vmem:[%s5156_s9 + $0xe0] sm:$0xff] }
 0x43f   : > { %1904 = vmatmul.mubr.f32.gmra.mrb[6].mxu1 %v1829_v43  ;;  %v3847_v43 = vpack.c.bf16 %v1933_v49, %v1931_v48  ;;  %v2160_v48 = vld [vmem:[#allocation7 + $0xc0] sm:$0xff]  ;;  %v2161_v49 = vld [vmem:[#allocation7 + $0xc8] sm:$0xff]  ;;  %v3915_v25 = vpack.c.bf16 %v3006_v24, %v3005_v23 }
 0x440   : > { %3836 = vmatpush1.bf16.msra.mxu1 %v3835_v31  ;;  %2016 = vmatprep.mubr.f32.mxu1 %v4379_v0  ;;  %v2138_v31 = vld [vmem:[#allocation7 + $0x10] sm:$0xff]  ;;  %v3883_v50 = vpack.c.bf16 %v2161_v49, %v2160_v48  ;;  %v2247_v48 = vld [vmem:[%s5156_s9 + $0x48] sm:$0xff]  ;;  %v3035_v24 = vld [vmem:[%s5156_s9 + $0x1c0] sm:$0xff] }
 0x441   : > { %3838 = vmatprep.subr.bf16.mxu1 %v3837_v32  ;;  %v2139_v32 = vld [vmem:[#allocation7 + $0x18] sm:$0xff] }
 0x442   : > { %v3873_v36 = vpack.c.bf16 %v2139_v32, %v2138_v31  ;;  %v2239_v31 = vld [vmem:[%s5156_s9 + $0x8] sm:$0xff] }
 0x444   : > { %3840 = vmatpush1.bf16.msra.mxu1 %v3839_v38  ;;  %v2140_v38 = vld [vmem:[#allocation7 + $0x20] sm:$0xff] }
 0x445   : > { %3842 = vmatprep.subr.bf16.mxu1 %v3841_v39  ;;  %v2141_v39 = vld [vmem:[#allocation7 + $0x28] sm:$0xff] }
 0x446   : > { %v3877_v41 = vpack.c.bf16 %v2141_v39, %v2140_v38  ;;  %v2242_v39 = vld [vmem:[%s5156_s9 + $0x20] sm:$0xff] }
 0x447   : > { %v3930_v40 = vpack.c.bf16 %v2243_v52, %v2242_v39  ;;  %v3040_v39 = vld [vmem:[%s5156_s9 + $0x1e8] sm:$0xff] }
 0x448   : > { %3844 = vmatpush1.bf16.msra.mxu1 %v3843_v46  ;;  %v2142_v46 = vld [vmem:[#allocation7 + $0x30] sm:$0xff] }
 0x449   : > { %3846 = vmatprep.subr.bf16.mxu1 %v3845_v47  ;;  %v2143_v47 = vld [vmem:[#allocation7 + $0x38] sm:$0xff] }
 0x44a   : > { %v3881_v51 = vpack.c.bf16 %v2143_v47, %v2142_v46  ;;  %v2246_v47 = vld [vmem:[%s5156_s9 + $0x40] sm:$0xff] }
 0x44b   : > { %v3936_v49 = vpack.c.bf16 %v2247_v48, %v2246_v47  ;;  %v3042_v47 = vld [vmem:[%s5156_s9 + $0x1f8] sm:$0xff] }
 0x44c   : > { %3848 = vmatpush1.bf16.msra.mxu1 %v3847_v43  ;;  %v2144_v43 = vld [vmem:[#allocation7 + $0x40] sm:$0xff] }
 0x44d   : > { %3850 = vmatprep.subr.bf16.mxu1 %v3849_v54  ;;  %v2145_v54 = vld [vmem:[#allocation7 + $0x48] sm:$0xff] }
 0x44e   : > { %v3885_v60 = vpack.c.bf16 %v2145_v54, %v2144_v43  ;;  %v2250_v54 = vld [vmem:[%s5156_s9 + $0x60] sm:$0xff] }
 0x44f   : > { %v3942_v59 = vpack.c.bf16 %v2251_v57, %v2250_v54  ;;  %v3043_v54 = vld [vmem:[%s5156_s9 + $0x200] sm:$0xff]  ;;  %v3044_v57 = vld [vmem:[%s5156_s9 + $0x208] sm:$0xff] }
 0x450   : > { %3852 = vmatpush1.bf16.msra.mxu1 %v3851_v28  ;;  %v2146_v28 = vld [vmem:[#allocation7 + $0x50] sm:$0xff] }
 0x451   : > { %3854 = vmatprep.subr.bf16.mxu1 %v3853_v62  ;;  %v2147_v62 = vld [vmem:[#allocation7 + $0x58] sm:$0xff] }
 0x452   : > { %v3889_v1 = vpack.c.bf16 %v2147_v62, %v2146_v28  ;;  %v3009_v62 = vld [vmem:[%s5156_s9 + $0xf0] sm:$0xff] }
 0x453   : > { %v3921_v42 = vpack.c.bf16 %v3010_v63, %v3009_v62  ;;  %v3046_v62 = vld [vmem:[%s5156_s9 + $0x218] sm:$0xff] }
 0x454   : > { %3856 = vmatpush1.bf16.msra.mxu1 %v3855_v3  ;;  %v2148_v3 = vld [vmem:[#allocation7 + $0x60] sm:$0xff] }
 0x455   : > { %3858 = vmatprep.subr.bf16.mxu1 %v3857_v4  ;;  %v2149_v4 = vld [vmem:[#allocation7 + $0x68] sm:$0xff] }
 0x458   : > { %3860 = vmatpush1.bf16.msra.mxu1 %v3859_v7  ;;  %v3893_v7 = vpack.c.bf16 %v2149_v4, %v2148_v3  ;;  %v3011_v4 = vld [vmem:[%s5156_s9 + $0x100] sm:$0xff] }
 0x45b   : > { %2017 = vmatmul.mubr.f32.vlgmr.msra.gmra.mrb[4].mxu1 %v4733_v53 }
 0x45c   : > { %2022 = vmatprep.mubr.f32.mxu1 %v4379_v0 }
 0x45f   : > { %2023 = vmatmul.mubr.f32.gmra.mrb[6].mxu1 %v1948_v44 }
 0x460   : > { %3286 = vmatprep.mubr.msk.f32.mxu1 %vm4382_vm10, %v4379_v0 }
 0x52e   : > { %v2018_v11 = vpop.f32.mrb[4].mxu1 }
 0x52f   : > { %v2045_v12 = vadd.f32 %v2038_v9, %v2018_v11  ;;  %v2020_v13 = vpop.f32.mrb[5].mxu1 }
 0x530   : > { %v2046_v14 = vadd.f32 %v2042_v10, %v2020_v13  ;;  %v2995_v13 = vld [vmem:[%s5156_s9 + $0x80] sm:$0xff] }
 0x531   : > { %4198 = vtanh.f32 %v2045_v12  ;;  %v4381_v12 = vmov 0.0|0.0  }
 0x532   : > { %v2024_v15 = vpop.f32.mrb[6].mxu1  ;;  %4200 = vtanh.f32 %v2046_v14  ;;  %3899 = vmatprep.subr.bf16.mxu1 %v4381_v12  ;;  %v2996_v14 = vld [vmem:[%s5156_s9 + $0x88] sm:$0xff] }
 0x533   : > { %v2047_v53 = vadd.f32 %v2038_v9, %v2024_v15  ;;  %v2026_v16 = vpop.f32.mrb[7].mxu1  ;;  %v2150_v9 = vld [vmem:[#allocation7 + $0x70] sm:$0xff]  ;;  %v3900_v15 = vpack.c.bf16 %v2996_v14, %v2995_v13 }
 0x534   : > { %v2048_v33 = vadd.f32 %v2042_v10, %v2026_v16  ;;  %v2151_v10 = vld [vmem:[#allocation7 + $0x78] sm:$0xff]  ;;  %v3013_v14 = vld [vmem:[%s5156_s9 + $0x110] sm:$0xff] }
 0x535   : > { %4202 = vtanh.f32 %v2047_v53  ;;  %v3897_v11 = vpack.c.bf16 %v2151_v10, %v2150_v9  ;;  %3901 = vmatpush3.bf16.msra.mxu1 %v3900_v15  ;;  %v2997_v53 = vld [vmem:[%s5156_s9 + $0x90] sm:$0xff]  ;;  %v2998_v16 = vld [vmem:[%s5156_s9 + $0x98] sm:$0xff] }
 0x536   : > { %4204 = vtanh.f32 %v2048_v33  ;;  %3902 = vmatprep.subr.bf16.mxu1 %v4381_v12  ;;  %v3903_v33 = vpack.c.bf16 %v2998_v16, %v2997_v53  ;;  %v3029_v9 = vld [vmem:[%s5156_s9 + $0x190] sm:$0xff]  ;;  %v3030_v10 = vld [vmem:[%s5156_s9 + $0x198] sm:$0xff]  ;;  %v3031_v16 = vld [vmem:[%s5156_s9 + $0x1a0] sm:$0xff] }
 0x537   : > { %v3014_v15 = vld [vmem:[%s5156_s9 + $0x118] sm:$0xff]  ;;  %v3975_v53 = vpack.c.bf16 %v3030_v10, %v3029_v9  ;;  %v3053_v10 = vld [vmem:[%s5156_s9 + $0x250] sm:$0xff] }
 0x539   : > { %3904 = vmatpush3.bf16.msra.mxu1 %v3903_v33  ;;  %v3032_v33 = vld [vmem:[%s5156_s9 + $0x1a8] sm:$0xff] }
 0x53a   : > { %3905 = vmatprep.subr.bf16.mxu1 %v4381_v12 }
 0x53b   : > { %v4199_v44 = vpop.eup %4198 }
 0x53c   : > { %v4201_v17 = vpop.eup %4200 }
 0x53f   : > { %v4203_v20 = vpop.eup %4202 }
 0x540   : > { %v4205_v55 = vpop.eup %4204  ;;  %v3864_v58 = vpack.c.bf16 %v4203_v20, %v4199_v44  ;;  %v2999_v44 = vld [vmem:[%s5156_s9 + $0xa0] sm:$0xff]  ;;  %v3002_v20 = vld [vmem:[%s5156_s9 + $0xb8] sm:$0xff] }
 0x541   : > { %v3861_v21 = vpack.c.bf16 %v4205_v55, %v4201_v17  ;;  %v3000_v17 = vld [vmem:[%s5156_s9 + $0xa8] sm:$0xff]  ;;  %v3909_v55 = vpack.c.bf16 %v3002_v20, %v3001_v19  ;;  %v3978_v19 = vpack.c.bf16 %v3032_v33, %v3031_v16  ;;  %v3033_v20 = vld [vmem:[%s5156_s9 + $0x1b0] sm:$0xff]  ;;  %v3058_v33 = vld [vmem:[%s5156_s9 + $0x278] sm:$0xff] }
 0x542   : > { %v3906_v18 = vpack.c.bf16 %v3000_v17, %v2999_v44  ;;  %v3951_v44 = vpack.c.bf16 %v3014_v15, %v3013_v14  ;;  %v3015_v17 = vld [vmem:[%s5156_s9 + $0x120] sm:$0xff]  ;;  %v3056_v15 = vld [vmem:[%s5156_s9 + $0x268] sm:$0xff]  ;;  %v3057_v16 = vld [vmem:[%s5156_s9 + $0x270] sm:$0xff] }
 0x543   : > { %3863 = vmatprep.subr.msk.bf16.mxu0 %vm3862_vm8, %v3861_v21  ;;  %v3004_v21 = vld [vmem:[%s5156_s9 + $0xc8] sm:$0xff]  ;;  %v3055_v14 = vld [vmem:[%s5156_s9 + $0x260] sm:$0xff] }
 0x544   : > { %3866 = vmatpush1.bf16.msk.msra.mxu0 %vm3862_vm8, %v3864_v58  ;;  %3907 = vmatpush3.bf16.msra.mxu1 %v3906_v18  ;;  %v3003_v58 = vld [vmem:[%s5156_s9 + $0xc0] sm:$0xff]  ;;  %v3016_v18 = vld [vmem:[%s5156_s9 + $0x128] sm:$0xff] }
 0x545   : > { %3868 = vmatprep.subr.bf16.mxu0 %v3867_v22  ;;  %3908 = vmatprep.subr.bf16.mxu1 %v4381_v12  ;;  %v3912_v22 = vpack.c.bf16 %v3004_v21, %v3003_v58  ;;  %v3954_v58 = vpack.c.bf16 %v3016_v18, %v3015_v17  ;;  %v3017_v21 = vld [vmem:[%s5156_s9 + $0x130] sm:$0xff]  ;;  %v2687_v18 = vld [vmem:[%s5158_s11] sm:$0xff] }
 0x547   : > { %2994 = vmatmul.mubr.msk.f32.vlgmr.msra.gmra.mrb[12].mxu0 %vm2054_vm9, %v2053_v27  ;;  %v3008_v27 = vld [vmem:[%s5156_s9 + $0xe8] sm:$0xff] }
 0x548   : > { %3870 = vmatpush3.bf16.msra.mxu0 %v3869_v29  ;;  %3910 = vmatpush3.bf16.msra.mxu1 %v3909_v55  ;;  %v3918_v29 = vpack.c.bf16 %v3008_v27, %v3007_v26  ;;  %v3034_v55 = vld [vmem:[%s5156_s9 + $0x1b8] sm:$0xff]  ;;  %v3019_v27 = vld [vmem:[%s5156_s9 + $0x140] sm:$0xff] }
 0x549   : > { %3872 = vmatprep.subr.bf16.mxu0 %v3871_v30  ;;  %3911 = vmatprep.subr.bf16.mxu1 %v4381_v12  ;;  %v2238_v30 = vld [vmem:[%s5156_s9] sm:$0xff]  ;;  %v3981_v23 = vpack.c.bf16 %v3034_v55, %v3033_v20  ;;  %v2689_v20 = vld [vmem:[%s5158_s11 + $0x10] sm:$0xff] }
 0x54a   : > { %v3924_v34 = vpack.c.bf16 %v2239_v31, %v2238_v30  ;;  %v3037_v31 = vld [vmem:[%s5156_s9 + $0x1d0] sm:$0xff] }
 0x54c   : > { %3874 = vmatpush3.bf16.msra.mxu0 %v3873_v36  ;;  %3913 = vmatpush3.bf16.msra.mxu1 %v3912_v22  ;;  %v2240_v36 = vld [vmem:[%s5156_s9 + $0x10] sm:$0xff]  ;;  %v3018_v22 = vld [vmem:[%s5156_s9 + $0x138] sm:$0xff] }
 0x54d   : > { %3876 = vmatprep.subr.bf16.mxu0 %v3875_v37  ;;  %3914 = vmatprep.subr.bf16.mxu1 %v4381_v12  ;;  %v2241_v37 = vld [vmem:[%s5156_s9 + $0x18] sm:$0xff]  ;;  %v3957_v26 = vpack.c.bf16 %v3018_v22, %v3017_v21  ;;  %v2692_v21 = vld [vmem:[%s5158_s11 + $0x28] sm:$0xff] }
 0x54e   : > { %v3927_v38 = vpack.c.bf16 %v2241_v37, %v2240_v36  ;;  %v3022_v36 = vld [vmem:[%s5156_s9 + $0x158] sm:$0xff] }
 0x550   : > { %3878 = vmatpush3.bf16.msra.mxu0 %v3877_v41  ;;  %3916 = vmatpush3.bf16.msra.mxu1 %v3915_v25  ;;  %v2244_v41 = vld [vmem:[%s5156_s9 + $0x30] sm:$0xff]  ;;  %v3036_v25 = vld [vmem:[%s5156_s9 + $0x1c8] sm:$0xff] }
 0x551   : > { %3880 = vmatprep.subr.bf16.mxu0 %v3879_v45  ;;  %3917 = vmatprep.subr.bf16.mxu1 %v4381_v12  ;;  %v2245_v45 = vld [vmem:[%s5156_s9 + $0x38] sm:$0xff]  ;;  %v3984_v30 = vpack.c.bf16 %v3036_v25, %v3035_v24 }
 0x552   : > { %v3933_v46 = vpack.c.bf16 %v2245_v45, %v2244_v41  ;;  %v3024_v41 = vld [vmem:[%s5156_s9 + $0x168] sm:$0xff]  ;;  %v2694_v24 = vld [vmem:[%s5158_s11 + $0x38] sm:$0xff] }
 0x554   : > { %3882 = vmatpush3.bf16.msra.mxu0 %v3881_v51  ;;  %3919 = vmatpush3.bf16.msra.mxu1 %v3918_v29  ;;  %v2248_v51 = vld [vmem:[%s5156_s9 + $0x50] sm:$0xff]  ;;  %v3020_v29 = vld [vmem:[%s5156_s9 + $0x148] sm:$0xff] }
 0x555   : > { %3884 = vmatprep.subr.bf16.mxu0 %v3883_v50  ;;  %3920 = vmatprep.subr.bf16.mxu1 %v4381_v12  ;;  %v2249_v50 = vld [vmem:[%s5156_s9 + $0x58] sm:$0xff] }
 0x556   : > { %v3939_v43 = vpack.c.bf16 %v2249_v50, %v2248_v51  ;;  %v3026_v51 = vld [vmem:[%s5156_s9 + $0x178] sm:$0xff] }
 0x558   : > { %3886 = vmatpush3.bf16.msra.mxu0 %v3885_v60  ;;  %v2252_v60 = vld [vmem:[%s5156_s9 + $0x70] sm:$0xff]  ;;  %3922 = vmatpush3.bf16.msra.mxu1 %v3921_v42  ;;  %v3047_v42 = vld [vmem:[%s5156_s9 + $0x220] sm:$0xff] }
 0x559   : > { %3888 = vmatprep.subr.bf16.mxu0 %v3887_v61  ;;  %v2253_v61 = vld [vmem:[%s5156_s9 + $0x78] sm:$0xff]  ;;  %3947 = vmatprep.subr.bf16.mxu1 %v4381_v12 }
 0x55a   : > { %v3945_v28 = vpack.c.bf16 %v2253_v61, %v2252_v60  ;;  %v3996_v60 = vpack.c.bf16 %v3044_v57, %v3043_v54  ;;  %v2783_v57 = vld [vmem:[#allocation9 + $0x40] sm:$0xff] }
 0x55c   : > { %3890 = vmatpush3.bf16.msra.mxu0 %v3889_v1  ;;  %v3027_v1 = vld [vmem:[%s5156_s9 + $0x180] sm:$0xff] }
 0x55d   : > { %3892 = vmatprep.subr.bf16.mxu0 %v3891_v2  ;;  %v3028_v2 = vld [vmem:[%s5156_s9 + $0x188] sm:$0xff] }
 0x560   : > { %3894 = vmatpush3.bf16.msra.mxu0 %v3893_v7  ;;  %v3972_v7 = vpack.c.bf16 %v3028_v2, %v3027_v1  ;;  %v3048_v1 = vld [vmem:[%s5156_s9 + $0x228] sm:$0xff] }
 0x561   : > { %3896 = vmatprep.subr.bf16.mxu0 %v3895_v8  ;;  %v4002_v2 = vpack.c.bf16 %v3048_v1, %v3047_v42 }
 0x564   : > { %3898 = vmatpush3.bf16.msra.mxu0 %v3897_v11  ;;  %v3948_v11 = vpack.c.bf16 %v3012_v5, %v3011_v4  ;;  %v3050_v4 = vld [vmem:[%s5156_s9 + $0x238] sm:$0xff] }
 0x565   : > { %3923 = vmatprep.subr.bf16.mxu0 %v4381_v12 }
 0x61a   : > { %v2131_v32 = vpop.f32.mrb[12].mxu0 }
 0x61b   : > { %v2133_v35 = vpop.f32.mrb[13].mxu0 }
 0x61c   : > { %2232 = vmatprep.mubr.f32.mxu0 %v2133_v35  ;;  %v3021_v35 = vld [vmem:[%s5156_s9 + $0x150] sm:$0xff] }
 0x61d   : > { %2233 = vmatmul.mubr.f32.vlgmr.msra.gmra.mrb[14].mxu0 %v2131_v32  ;;  %v3038_v32 = vld [vmem:[%s5156_s9 + $0x1d8] sm:$0xff]  ;;  %v3963_v52 = vpack.c.bf16 %v3022_v36, %v3021_v35  ;;  %v2700_v35 = vld [vmem:[%s5158_s11 + $0x68] sm:$0xff] }
 0x61e   : > { %3925 = vmatpush3.bf16.msra.mxu0 %v3924_v34  ;;  %3321 = vmatprep.mubr.msk.f32.mxu0 %vm4382_vm10, %v4379_v0  ;;  %v3960_v34 = vpack.c.bf16 %v3020_v29, %v3019_v27  ;;  %v3987_v37 = vpack.c.bf16 %v3038_v32, %v3037_v31  ;;  %v2696_v27 = vld [vmem:[%s5158_s11 + $0x48] sm:$0xff]  ;;  %v2698_v31 = vld [vmem:[%s5158_s11 + $0x58] sm:$0xff] }
 0x61f   : > { %3926 = vmatprep.subr.bf16.mxu0 %v4381_v12 }
 0x622   : > { %3928 = vmatpush3.bf16.msra.mxu0 %v3927_v38  ;;  %v3039_v38 = vld [vmem:[%s5156_s9 + $0x1e0] sm:$0xff] }
 0x623   : > { %3929 = vmatprep.subr.bf16.mxu0 %v4381_v12  ;;  %v3990_v45 = vpack.c.bf16 %v3040_v39, %v3039_v38  ;;  %v2702_v38 = vld [vmem:[%s5158_s11 + $0x78] sm:$0xff] }
 0x626   : > { %3931 = vmatpush3.bf16.msra.mxu0 %v3930_v40  ;;  %v3023_v40 = vld [vmem:[%s5156_s9 + $0x160] sm:$0xff] }
 0x627   : > { %3932 = vmatprep.subr.bf16.mxu0 %v4381_v12  ;;  %v3966_v48 = vpack.c.bf16 %v3024_v41, %v3023_v40  ;;  %v2776_v40 = vld [vmem:[#allocation9 + $0x8] sm:$0xff]  ;;  %v2777_v41 = vld [vmem:[#allocation9 + $0x10] sm:$0xff] }
 0x62a   : > { %3934 = vmatpush3.bf16.msra.mxu0 %v3933_v46  ;;  %v3041_v46 = vld [vmem:[%s5156_s9 + $0x1f0] sm:$0xff] }
 0x62b   : > { %3935 = vmatprep.subr.bf16.mxu0 %v4381_v12  ;;  %v3993_v50 = vpack.c.bf16 %v3042_v47, %v3041_v46  ;;  %v2778_v46 = vld [vmem:[#allocation9 + $0x18] sm:$0xff] }
 0x62c   : > { %v4047_v47 = vpack.c.bf16 %v2778_v46, %v2777_v41 }
 0x62e   : > { %3937 = vmatpush3.bf16.msra.mxu0 %v3936_v49  ;;  %v3025_v49 = vld [vmem:[%s5156_s9 + $0x170] sm:$0xff] }
 0x62f   : > { %3938 = vmatprep.subr.bf16.mxu0 %v4381_v12 }
 0x632   : > { %3940 = vmatpush3.bf16.msra.mxu0 %v3939_v43  ;;  %v3969_v43 = vpack.c.bf16 %v3026_v51, %v3025_v49  ;;  %v2780_v49 = vld [vmem:[#allocation9 + $0x28] sm:$0xff] }
 0x633   : > { %3941 = vmatprep.subr.bf16.mxu0 %v4381_v12 }
 0x636   : > { %3943 = vmatpush3.bf16.msra.mxu0 %v3942_v59 }
 0x637   : > { %3944 = vmatprep.subr.bf16.mxu0 %v4381_v12 }
 0x63a   : > { %3946 = vmatpush3.bf16.msra.mxu0 %v3945_v28  ;;  %v3045_v28 = vld [vmem:[%s5156_s9 + $0x210] sm:$0xff] }
 0x63b   : > { %3971 = vmatprep.subr.bf16.mxu0 %v4381_v12  ;;  %v3999_v63 = vpack.c.bf16 %v3046_v62, %v3045_v28 }
 0x6f0   : > { %v3132_v3 = vpop.f32.mrb[14].mxu0 }
 0x6f1   : > { %v3133_v6 = vpop.f32.mrb[15].mxu0 }
 0x6f2   : > { %v4895_v8 = vadd.f32 %v3133_v6, %v3132_v3  ;;  %v3049_v3 = vld [vmem:[%s5156_s9 + $0x230] sm:$0xff]  ;;  %v3051_v6 = vld [vmem:[%s5156_s9 + $0x240] sm:$0xff] }
 0x6f3   : > { %v4005_v5 = vpack.c.bf16 %v3050_v4, %v3049_v3 }
 0x6f4   : > { %3322 = vmatmul.mubr.f32.vlgmr.msra.gmra.mrb[16].mxu0 %v4895_v8  ;;  %v2272_v13 = vrot.slane %v4895_v8, 1  ;;  %v2521_v59 = vrot.slane %v4895_v8, 3  ;;  %v2431_v61 = vrot.slane %v4895_v8, 2  ;;  %v2611_v17 = vrot.slane %v4895_v8, 4  ;;  %v2690_v8 = vld [vmem:[%s5158_s11 + $0x18] sm:$0xff] }
 0x6f5   : > { %3973 = vmatpush3.bf16.msra.mxu0 %v3972_v7  ;;  %3391 = vmatprep.mubr.msk.f32.mxu0 %vm4382_vm10, %v4379_v0  ;;  %v3052_v7 = vld [vmem:[%s5156_s9 + $0x248] sm:$0xff] }
 0x6f6   : > { %3287 = vmatmul.mubr.f32.vlgmr.msra.gmra.mrb[8].mxu1 %v2272_v13  ;;  %3974 = vmatprep.subr.bf16.mxu0 %v4381_v12  ;;  %v4008_v9 = vpack.c.bf16 %v3052_v7, %v3051_v6 }
 0x6f7   : > { %3949 = vmatpush3.bf16.msra.mxu1 %v3948_v11  ;;  %3356 = vmatprep.mubr.msk.f32.mxu1 %vm4382_vm10, %v4379_v0  ;;  %v3054_v11 = vld [vmem:[%s5156_s9 + $0x258] sm:$0xff] }
 0x6f8   : > { %3950 = vmatprep.subr.bf16.mxu1 %v4381_v12  ;;  %v4011_v13 = vpack.c.bf16 %v3054_v11, %v3053_v10 }
 0x6f9   : > { %3976 = vmatpush3.bf16.msra.mxu0 %v3975_v53  ;;  %v4014_v53 = vpack.c.bf16 %v3056_v15, %v3055_v14  ;;  %v2785_v15 = vld [vmem:[#allocation9 + $0x50] sm:$0xff] }
 0x6fa   : > { %3977 = vmatprep.subr.bf16.mxu0 %v4381_v12 }
 0x6fb   : > { %3952 = vmatpush3.bf16.msra.mxu1 %v3951_v44  ;;  %v4017_v44 = vpack.c.bf16 %v3058_v33, %v3057_v16  ;;  %v2787_v33 = vld [vmem:[#allocation9 + $0x60] sm:$0xff] }
 0x6fc   : > { %3953 = vmatprep.subr.bf16.mxu1 %v4381_v12 }
 0x6fd   : > { %3979 = vmatpush3.bf16.msra.mxu0 %v3978_v19  ;;  %v2688_v19 = vld [vmem:[%s5158_s11 + $0x8] sm:$0xff] }
 0x6fe   : > { %3980 = vmatprep.subr.bf16.mxu0 %v4381_v12  ;;  %v4020_v55 = vpack.c.bf16 %v2688_v19, %v2687_v18  ;;  %v2789_v18 = vld [vmem:[#allocation9 + $0x70] sm:$0xff]  ;;  %v2790_v19 = vld [vmem:[#allocation9 + $0x78] sm:$0xff] }
 0x6ff   : > { %3955 = vmatpush3.bf16.msra.mxu1 %v3954_v58  ;;  %v4023_v58 = vpack.c.bf16 %v2690_v8, %v2689_v20  ;;  %v4065_v20 = vpack.c.bf16 %v2790_v19, %v2789_v18 }
 0x700   : > { %3956 = vmatprep.subr.bf16.mxu1 %v4381_v12 }
 0x701   : > { %3982 = vmatpush3.bf16.msra.mxu0 %v3981_v23  ;;  %v2693_v23 = vld [vmem:[%s5158_s11 + $0x30] sm:$0xff] }
 0x702   : > { %3983 = vmatprep.subr.bf16.mxu0 %v4381_v12  ;;  %v4029_v25 = vpack.c.bf16 %v2694_v24, %v2693_v23 }
 0x703   : > { %3958 = vmatpush3.bf16.msra.mxu1 %v3957_v26  ;;  %v2695_v26 = vld [vmem:[%s5158_s11 + $0x40] sm:$0xff] }
 0x704   : > { %3959 = vmatprep.subr.bf16.mxu1 %v4381_v12  ;;  %v4032_v29 = vpack.c.bf16 %v2696_v27, %v2695_v26 }
 0x705   : > { %3985 = vmatpush3.bf16.msra.mxu0 %v3984_v30  ;;  %v2697_v30 = vld [vmem:[%s5158_s11 + $0x50] sm:$0xff] }
 0x706   : > { %3986 = vmatprep.subr.bf16.mxu0 %v4381_v12  ;;  %v4035_v32 = vpack.c.bf16 %v2698_v31, %v2697_v30 }
 0x707   : > { %3961 = vmatpush3.bf16.msra.mxu1 %v3960_v34  ;;  %v2699_v34 = vld [vmem:[%s5158_s11 + $0x60] sm:$0xff] }
 0x708   : > { %3962 = vmatprep.subr.bf16.mxu1 %v4381_v12  ;;  %v4038_v36 = vpack.c.bf16 %v2700_v35, %v2699_v34 }
 0x709   : > { %3988 = vmatpush3.bf16.msra.mxu0 %v3987_v37  ;;  %v2701_v37 = vld [vmem:[%s5158_s11 + $0x70] sm:$0xff] }
 0x70a   : > { %3989 = vmatprep.subr.bf16.mxu0 %v4381_v12  ;;  %v4041_v39 = vpack.c.bf16 %v2702_v38, %v2701_v37 }
 0x70b   : > { %3964 = vmatpush3.bf16.msra.mxu1 %v3963_v52  ;;  %v2775_v52 = vld [vmem:[#allocation9] sm:$0xff] }
 0x70c   : > { %3965 = vmatprep.subr.bf16.mxu1 %v4381_v12 }
 0x70d   : > { %3991 = vmatpush3.bf16.msra.mxu0 %v3990_v45  ;;  %v4044_v45 = vpack.c.bf16 %v2776_v40, %v2775_v52 }
 0x70e   : > { %3992 = vmatprep.subr.bf16.mxu0 %v4381_v12 }
 0x70f   : > { %3967 = vmatpush3.bf16.msra.mxu1 %v3966_v48  ;;  %v2779_v48 = vld [vmem:[#allocation9 + $0x20] sm:$0xff] }
 0x710   : > { %3968 = vmatprep.subr.bf16.mxu1 %v4381_v12  ;;  %v4050_v51 = vpack.c.bf16 %v2780_v49, %v2779_v48 }
 0x711   : > { %3994 = vmatpush3.bf16.msra.mxu0 %v3993_v50  ;;  %v2781_v50 = vld [vmem:[#allocation9 + $0x30] sm:$0xff] }
 0x712   : > { %4019 = vmatprep.subr.bf16.mxu0 %v4381_v12 }
 0x713   : > { %3970 = vmatpush3.bf16.msra.mxu1 %v3969_v43  ;;  %v2782_v43 = vld [vmem:[#allocation9 + $0x38] sm:$0xff] }
 0x714   : > { %3392 = vmatmul.mubr.f32.vlgmr.msra.gmra.mrb[18].mxu0 %v2521_v59  ;;  %3995 = vmatprep.subr.bf16.mxu1 %v4381_v12  ;;  %v4053_v54 = vpack.c.bf16 %v2782_v43, %v2781_v50  ;;  %v2784_v59 = vld [vmem:[#allocation9 + $0x48] sm:$0xff] }
 0x715   : > { %3461 = vmatprep.mubr.msk.f32.mxu0 %vm4382_vm10, %v4379_v0  ;;  %4021 = vmatpush3.bf16.msra.mxu0 %v4020_v55  ;;  %v2703_v55 = vld [vmem:[%s5184_s17] sm:$0x1] }
 0x716   : > { %3357 = vmatmul.mubr.f32.vlgmr.msra.gmra.mrb[10].mxu1 %v2431_v61  ;;  %4022 = vmatprep.subr.bf16.mxu0 %v4381_v12 }
 0x717   : > { %3997 = vmatpush3.bf16.msra.mxu1 %v3996_v60  ;;  %3426 = vmatprep.mubr.msk.f32.mxu1 %vm4382_vm10, %v4379_v0  ;;  %v4056_v60 = vpack.c.bf16 %v2784_v59, %v2783_v57 }
 0x718   : > { %3998 = vmatprep.subr.bf16.mxu1 %v4381_v12 }
 0x719   : > { %4024 = vmatpush3.bf16.msra.mxu0 %v4023_v58 }
 0x71a   : > { %4025 = vmatprep.subr.bf16.mxu0 %v4381_v12 }
 0x71b   : > { %4000 = vmatpush3.bf16.msra.mxu1 %v3999_v63 }
 0x71c   : > { %4001 = vmatprep.subr.bf16.mxu1 %v4381_v12 }
 0x71f   : > { %4003 = vmatpush3.bf16.msra.mxu1 %v4002_v2 }
 0x720   : > { %4004 = vmatprep.subr.bf16.mxu1 %v4381_v12 }
 0x723   : > { %4006 = vmatpush3.bf16.msra.mxu1 %v4005_v5 }
 0x724   : > { %4007 = vmatprep.subr.bf16.mxu1 %v4381_v12 }
 0x727   : > { %4009 = vmatpush3.bf16.msra.mxu1 %v4008_v9  ;;  %v2684_v9 = vld [vmem:[%s5157_s10] sm:$0x1] }
 0x728   : > { %4010 = vmatprep.subr.bf16.mxu1 %v4381_v12 }
 0x72b   : > { %4012 = vmatpush3.bf16.msra.mxu1 %v4011_v13 }
 0x72c   : > { %4013 = vmatprep.subr.bf16.mxu1 %v4381_v12 }
 0x72f   : > { %4015 = vmatpush3.bf16.msra.mxu1 %v4014_v53  ;;  %v2786_v53 = vld [vmem:[#allocation9 + $0x58] sm:$0xff] }
 0x730   : > { %4016 = vmatprep.subr.bf16.mxu1 %v4381_v12  ;;  %v4059_v16 = vpack.c.bf16 %v2786_v53, %v2785_v15 }
 0x733   : > { %4018 = vmatpush3.bf16.msra.mxu1 %v4017_v44  ;;  %v2788_v44 = vld [vmem:[#allocation9 + $0x68] sm:$0xff] }
 0x734   : > { %4043 = vmatprep.subr.bf16.mxu1 %v4381_v12 }
 0x736   : > { %3427 = vmatmul.mubr.f32.vlgmr.msra.gmra.mrb[12].mxu1 %v2611_v17  ;;  %v4062_v17 = vpack.c.bf16 %v2788_v44, %v2787_v33 }
 0x737   : > { %3496 = vmatprep.mubr.msk.f32.mxu1 %vm4382_vm10, %v4379_v0  ;;  %v2691_v0 = vld [vmem:[%s5158_s11 + $0x20] sm:$0xff]  ;;  %4045 = vmatpush3.bf16.msra.mxu1 %v4044_v45 }
 0x738   : > { %v4026_v22 = vpack.c.bf16 %v2692_v21, %v2691_v0  ;;  %4046 = vmatprep.subr.bf16.mxu1 %v4381_v12 }
 0x73a   : > { %4027 = vmatpush3.bf16.msra.mxu0 %v4026_v22  ;;  %v2791_v22 = vld [vmem:[%s5185_s24] sm:$0x1] }
 0x73b   : > { %4028 = vmatprep.subr.bf16.mxu0 %v4381_v12  ;;  %4048 = vmatpush3.bf16.msra.mxu1 %v4047_v47 }
 0x73c   : > { %4049 = vmatprep.subr.bf16.mxu1 %v4381_v12 }
 0x73e   : > { %4030 = vmatpush3.bf16.msra.mxu0 %v4029_v25 }
 0x73f   : > { %4031 = vmatprep.subr.bf16.mxu0 %v4381_v12  ;;  %4051 = vmatpush3.bf16.msra.mxu1 %v4050_v51 }
 0x740   : > { %4052 = vmatprep.subr.bf16.mxu1 %v4381_v12 }
 0x742   : > { %4033 = vmatpush3.bf16.msra.mxu0 %v4032_v29 }
 0x743   : > { %4034 = vmatprep.subr.bf16.mxu0 %v4381_v12  ;;  %4054 = vmatpush3.bf16.msra.mxu1 %v4053_v54 }
 0x744   : > { %4055 = vmatprep.subr.bf16.mxu1 %v4381_v12 }
 0x746   : > { %4036 = vmatpush3.bf16.msra.mxu0 %v4035_v32 }
 0x747   : > { %4037 = vmatprep.subr.bf16.mxu0 %v4381_v12  ;;  %4057 = vmatpush3.bf16.msra.mxu1 %v4056_v60 }
 0x748   : > { %4058 = vmatprep.subr.bf16.mxu1 %v4381_v12 }
 0x74a   : > { %4039 = vmatpush3.bf16.msra.mxu0 %v4038_v36 }
 0x74b   : > { %4040 = vmatprep.subr.bf16.mxu0 %v4381_v12  ;;  %4060 = vmatpush3.bf16.msra.mxu1 %v4059_v16 }
 0x74c   : > { %4061 = vmatprep.subr.bf16.mxu1 %v4381_v12 }
 0x74e   : > { %4042 = vmatpush3.bf16.msra.mxu0 %v4041_v39 }
 0x74f   : > { %4063 = vmatpush3.bf16.msra.mxu1 %v4062_v17 }
 0x750   : > { %4064 = vmatprep.subr.bf16.mxu1 %v4381_v12 }
 0x753   : > { %4066 = vmatpush3.bf16.msra.mxu1 %v4065_v20 }
 0x7c7   : > { %v2410_v61 = vpop.f32.mrb[16].mxu0 }
 0x7c8   : > { %v3323_v28 = vpop.f32.mrb[17].mxu0 }
 0x7c9   : > { %v2340_v62 = vpop.f32.mrb[8].mxu1 }
 0x7ca   : > { %v2411_v63 = vadd.f32 %v2410_v61, %v2340_v62  ;;  %v3288_v42 = vpop.f32.mrb[9].mxu1 }
 0x7e7   : > { %v2589_v1 = vpop.f32.mrb[18].mxu0 }
 0x7e8   : > { %v3393_v2 = vpop.f32.mrb[19].mxu0 }
 0x7e9   : > { %v2499_v3 = vpop.f32.mrb[10].mxu1 }
 0x7ea   : > { %v2503_v4 = vadd.f32 %v2499_v3, %v2411_v63  ;;  %v3358_v5 = vpop.f32.mrb[11].mxu1 }
 0x7ec   : > { %v2593_v6 = vadd.f32 %v2589_v1, %v2503_v4 }
 0x809   : > { %v2679_v7 = vpop.f32.mrb[12].mxu1 }
 0x80a   : > { %v2683_v10 = vadd.f32 %v2679_v7, %v2593_v6  ;;  %v3428_v11 = vpop.f32.mrb[13].mxu1 }
 0x80c   : > { %v2685_v13 = vadd.f32 %v2684_v9, %v2683_v10 }
 0x80e   : > { %4206 = vtanh.f32 %v2685_v13 }
 0x818   : > { %v4207_v14 = vpop.eup %4206 }
 0x819   : > { %3462 = vmatmul.mubr.f32.vlgmr.msra.gmra.mrb[20].mxu0 %v4207_v14 }
 0x8ec   : > { %v2770_v8 = vpop.f32.mrb[20].mxu0 }
 0x8ed   : > { %v2771_v58 = vadd.f32 %v2770_v8, %v2703_v55  ;;  %v3463_v0 = vpop.f32.mrb[21].mxu0 }
 0x8ef   : > { %4208 = vtanh.f32 %v2771_v58 }
 0x8f9   : > { %v4209_v21 = vpop.eup %4208 }
 0x8fa   : > { %3497 = vmatmul.mubr.f32.vlgmr.msra.gmra.mrb[14].mxu1 %v4209_v21 }
 0x9cd   : > { %v2858_v23 = vpop.f32.mrb[14].mxu1 }
 0x9ce   : > { %v2859_v24 = vadd.f32 %v2858_v23, %v2791_v22  ;;  %v3498_v25 = vpop.f32.mrb[15].mxu1 }
 0x9d0   : > { %v2865_v12 = vrot.slane %v2859_v24, %v4687_v56 }
 0x9d2   : > { %2866 = vst [vmem:[%s565_s16] sm:$0xff] %v2865_v12 }
 0x9d3 PF: > { %s5187_s15 = sld [smem:[#allocation13_spill]] }
 0x9d9   : > { %s28_s18 = sadd.s32 1, %s5187_s15  }
 0x9da   : > { %p25_p6 = scmp.ge.s32.totalorder %s28_s18, 4  }
 0x9dc   :  { %27 = sbr.rel (!%p25_p6) target bundleno = 7 (0x7), region = 143 }
 0x9e3   :  { %2886 = vsyncpa [#allocation3], 1 }
 0x9e4   :  { %2888 = vsyncpa [#allocation3 + $0x1], 1 }
 0x9e5   :  { %2889 = vsyncpa [#allocation5], 1 }
 0x9e6   :  { %2890 = vsyncpa [#allocation8], 1 }

</bundles_post_ra>
